<compile_context>
chip_gen: v5e
topology: v5e:2x2
jax: 0.10.0
libtpu: 0.0.40
codegen_flags: <defaults>
</compile_context>

<pallas_src>
import numpy as np
import jax
import jax.numpy as jnp
from jax.experimental import pallas as pl
from jax.experimental.pallas import tpu as pltpu


NODE_PAD = 256                     # node-count padding granularity
EDGE_PAD = 256                     # edge-count padding granularity
LANE = 128                         # feature-dim padding target (lane width)
X_RESIDENT_BYTES = 8 * 1024 * 1024   # keep X resident in VMEM when <= 8 MiB
VMEM_LIMIT = 48 * 1024 * 1024         # explicit scoped-VMEM limit (v7x-safe)


def _rup(x, m):
    return ((x + m - 1) // m) * m


def _pick_tile(n, candidates):
    for c in candidates:
        if c <= n and n % c == 0:
            return c
    return n


def _lrelu(x, slope):
    return jnp.where(x >= 0, x, slope * x)


def _valid_rows(n_valid, tm):
    # NOTE: must be called at the *top level* of a kernel body; pl.program_id
    # inside a pl.when branch does not lower under the host interpreter.
    rows = pl.program_id(0) * tm + jax.lax.broadcasted_iota(jnp.int32, (tm, 1), 0)
    return rows < n_valid


def _sum_to_11(x):
    # lane reduce then sublane reduce -> (1, 1)
    return jnp.sum(jnp.sum(x, axis=1, keepdims=True), axis=0, keepdims=True)


# ----------------------------------------------------------------------------
# Pallas kernels
# ----------------------------------------------------------------------------

def make_graphconv_kernel(n_dst, tm, ts, resident_x, combine=None):
    """LeakyReLU_{0.01}((A@X)@W + b), optional mean/max combine with `other`."""

    def kernel(a_ref, x_ref, w_ref, b_ref, *rest):
        if combine is None:
            o_ref, acc_ref = rest
        else:
            other_ref, o_ref, acc_ref = rest

        k = pl.program_id(1)
        last_k = pl.num_programs(1) - 1
        row_ok = _valid_rows(n_dst, tm)          # (tm, 1) bool, top-level

        @pl.when(k == 0)
        def _():
            acc_ref[...] = jnp.zeros_like(acc_ref)

        x_blk = x_ref[pl.ds(k * ts, ts), :] if resident_x else x_ref[...]
        acc_ref[...] += jnp.dot(a_ref[...], x_blk,
                                preferred_element_type=jnp.float32)

        @pl.when(k == last_k)
        def _():
            z = jnp.dot(acc_ref[...].astype(jnp.bfloat16), w_ref[...],
                        preferred_element_type=jnp.float32) + b_ref[...]
            out = _lrelu(z, 0.01)
            if combine == "mean":
                out = 0.5 * (out + other_ref[...].astype(jnp.float32))
            elif combine == "max":
                out = jnp.maximum(out, other_ref[...].astype(jnp.float32))
            o_ref[...] = jnp.where(row_ok, out, 0.0).astype(o_ref.dtype)

    return kernel


def make_dual_graphconv_kernel(n_dst, tm, ts, resident_x):
    """Two graphconvs sharing one adjacency block: A loaded once per grid step."""

    def kernel(a_ref, x1_ref, w1_ref, b1_ref, x2_ref, w2_ref, b2_ref,
               o1_ref, o2_ref, acc1_ref, acc2_ref):
        k = pl.program_id(1)
        last_k = pl.num_programs(1) - 1
        row_ok = _valid_rows(n_dst, tm)

        @pl.when(k == 0)
        def _():
            acc1_ref[...] = jnp.zeros_like(acc1_ref)
            acc2_ref[...] = jnp.zeros_like(acc2_ref)

        a = a_ref[...]
        if resident_x:
            x1_blk = x1_ref[pl.ds(k * ts, ts), :]
            x2_blk = x2_ref[pl.ds(k * ts, ts), :]
        else:
            x1_blk = x1_ref[...]
            x2_blk = x2_ref[...]
        acc1_ref[...] += jnp.dot(a, x1_blk, preferred_element_type=jnp.float32)
        acc2_ref[...] += jnp.dot(a, x2_blk, preferred_element_type=jnp.float32)

        @pl.when(k == last_k)
        def _():
            z1 = jnp.dot(acc1_ref[...].astype(jnp.bfloat16), w1_ref[...],
                         preferred_element_type=jnp.float32) + b1_ref[...]
            z2 = jnp.dot(acc2_ref[...].astype(jnp.bfloat16), w2_ref[...],
                         preferred_element_type=jnp.float32) + b2_ref[...]
            o1_ref[...] = jnp.where(row_ok, _lrelu(z1, 0.01), 0.0).astype(o1_ref.dtype)
            o2_ref[...] = jnp.where(row_ok, _lrelu(z2, 0.01), 0.0).astype(o2_ref.dtype)

    return kernel


def gat_proj_kernel(x_ref, w_ref, al_ref, ar_ref, z_ref, el_ref, er_ref):
    # z = X@W (bf16 MXU, f32 acc); el/er are VPU row reductions (no (N,F)@(F,1)).
    z = jnp.dot(x_ref[...], w_ref[...], preferred_element_type=jnp.float32)
    z_ref[...] = z.astype(jnp.bfloat16)
    el_ref[...] = jnp.sum(z * al_ref[...], axis=-1, keepdims=True)   # (tm, 1)
    er_ref[...] = jnp.sum(z * ar_ref[...], axis=-1, keepdims=True)   # (tm, 1)


def make_gat_attend_kernel(n_dst, tm):
    """Streaming (flash-style) masked softmax over src tiles + aggregation."""

    def kernel(adj_ref, er_ref, el_ref, z_ref, b_ref, o_ref, m_sc, l_sc, acc_sc):
        k = pl.program_id(1)
        last_k = pl.num_programs(1) - 1
        row_ok = _valid_rows(n_dst, tm)

        @pl.when(k == 0)
        def _():
            m_sc[...] = jnp.full_like(m_sc, -1e30)
            l_sc[...] = jnp.zeros_like(l_sc)
            acc_sc[...] = jnp.zeros_like(acc_sc)

        mask = adj_ref[...].astype(jnp.float32) > 0.0          # int8 mask stream
        e = _lrelu(er_ref[...] + el_ref[...], 0.2)              # GAT slope 0.2
        e = jnp.where(mask, e, -1e30)
        m_prev = m_sc[...]
        m_new = jnp.maximum(m_prev, jnp.max(e, axis=-1, keepdims=True))
        alpha = jnp.exp(m_prev - m_new)
        # no second where: masked entries underflow to exactly 0; stale tiles
        # (no neighbor yet) are later killed by alpha = exp(-1e30 - m) == 0.
        p = jnp.exp(e - m_new)
        l_sc[...] = alpha * l_sc[...] + jnp.sum(p, axis=-1, keepdims=True)
        acc_sc[...] = alpha * acc_sc[...] + jnp.dot(
            p.astype(jnp.bfloat16), z_ref[...], preferred_element_type=jnp.float32)
        m_sc[...] = m_new

        @pl.when(k == last_k)
        def _():
            denom = jnp.maximum(l_sc[...], 1e-20)               # isolated / padded rows
            out = _lrelu(acc_sc[...] / denom + b_ref[...], 0.01)
            o_ref[...] = jnp.where(row_ok, out, 0.0).astype(o_ref.dtype)

    return kernel


def rating_pre_kernel(u_ref, i_ref, r_ref, s_ref, sse_ref, sae_ref):
    # fused per-edge dot-product score + rating MSE/MAE partial sums
    step = pl.program_id(0)
    u = u_ref[...].astype(jnp.float32)
    v = i_ref[...].astype(jnp.float32)
    s = jnp.sum(u * v, axis=-1, keepdims=True)
    s_ref[...] = s
    d = r_ref[...] - s                                          # padded rows: 0 - 0 = 0

    @pl.when(step == 0)
    def _():
        sse_ref[...] = jnp.zeros_like(sse_ref)
        sae_ref[...] = jnp.zeros_like(sae_ref)

    sse_ref[...] += _sum_to_11(d * d)
    sae_ref[...] += _sum_to_11(jnp.abs(d))


def make_user_loss_kernel(n_valid, tm):
    """Per-row-tile partial sums: |x|+|t|+|a| (reg) and attitude-L1 for users."""

    def kernel(x_ref, t_ref, a_ref, w_ref, b_ref, reg_ref, latt_ref):
        step = pl.program_id(0)
        row_ok = _valid_rows(n_valid, tm)
        x32 = x_ref[...].astype(jnp.float32)
        t32 = t_ref[...].astype(jnp.float32)
        a32 = a_ref[...].astype(jnp.float32)
        reg_part = (_sum_to_11(jnp.abs(x32)) + _sum_to_11(jnp.abs(t32))
                    + _sum_to_11(jnp.abs(a32)))
        pred = jnp.dot(x_ref[...], w_ref[...],
                       preferred_element_type=jnp.float32) + b_ref[...]
        latt_part = _sum_to_11(jnp.where(row_ok, jnp.abs(pred - a32), 0.0))

        @pl.when(step == 0)
        def _():
            reg_ref[...] = jnp.zeros_like(reg_ref)
            latt_ref[...] = jnp.zeros_like(latt_ref)

        reg_ref[...] += reg_part
        latt_ref[...] += latt_part

    return kernel


def make_item_loss_kernel(n_valid, tm):
    """Per-row-tile partial sums: |x|+|a| (reg), |x-a| and attitude-L1 for items."""

    def kernel(x_ref, a_ref, w_ref, b_ref, reg_ref, lax_ref, latt_ref):
        step = pl.program_id(0)
        row_ok = _valid_rows(n_valid, tm)
        x32 = x_ref[...].astype(jnp.float32)
        a32 = a_ref[...].astype(jnp.float32)
        reg_part = _sum_to_11(jnp.abs(x32)) + _sum_to_11(jnp.abs(a32))
        lax_part = _sum_to_11(jnp.abs(x32 - a32))
        pred = jnp.dot(x_ref[...], w_ref[...],
                       preferred_element_type=jnp.float32) + b_ref[...]
        latt_part = _sum_to_11(jnp.where(row_ok, jnp.abs(pred - a32), 0.0))

        @pl.when(step == 0)
        def _():
            reg_ref[...] = jnp.zeros_like(reg_ref)
            lax_ref[...] = jnp.zeros_like(lax_ref)
            latt_ref[...] = jnp.zeros_like(latt_ref)

        reg_ref[...] += reg_part
        lax_ref[...] += lax_part
        latt_ref[...] += latt_part

    return kernel


# ----------------------------------------------------------------------------
# pallas_call wrappers
# ----------------------------------------------------------------------------

_CP_2D = pltpu.CompilerParams(dimension_semantics=("parallel", "arbitrary"),
                              vmem_limit_bytes=VMEM_LIMIT)
_CP_1D_PAR = pltpu.CompilerParams(dimension_semantics=("parallel",),
                                  vmem_limit_bytes=VMEM_LIMIT)
_CP_1D_ARB = pltpu.CompilerParams(dimension_semantics=("arbitrary",),
                                  vmem_limit_bytes=VMEM_LIMIT)


def graphconv(a, x, w, b, n_dst, combine=None, other=None):
    nd, ns = a.shape
    f = w.shape[1]
    tm = _pick_tile(nd, (1024, 512, 256))
    ts = _pick_tile(ns, (512, 256))
    resident = ns * f * x.dtype.itemsize <= X_RESIDENT_BYTES
    if resident:
        x_spec = pl.BlockSpec((ns, f), lambda i, k: (0, 0))     # single DMA, resident
    else:
        x_spec = pl.BlockSpec((ts, f), lambda i, k: (k, 0))
    in_specs = [
        pl.BlockSpec((tm, ts), lambda i, k: (i, k)),
        x_spec,
        pl.BlockSpec((f, f), lambda i, k: (0, 0)),
        pl.BlockSpec((1, f), lambda i, k: (0, 0)),
    ]
    args = [a, x, w, b]
    if other is not None:
        in_specs.append(pl.BlockSpec((tm, f), lambda i, k: (i, 0)))
        args.append(other)
    return pl.pallas_call(
        make_graphconv_kernel(n_dst, tm, ts, resident, combine),
        grid=(nd // tm, ns // ts),
        in_specs=in_specs,
        out_specs=pl.BlockSpec((tm, f), lambda i, k: (i, 0)),
        out_shape=jax.ShapeDtypeStruct((nd, f), jnp.bfloat16),
        scratch_shapes=[pltpu.VMEM((tm, f), jnp.float32)],
        compiler_params=_CP_2D,
    )(*args)


def graphconv_dual(a, x1, w1, b1, x2, w2, b2, n_dst):
    nd, ns = a.shape
    f = w1.shape[1]
    tm = _pick_tile(nd, (1024, 512, 256))
    ts = _pick_tile(ns, (512, 256))
    x_bytes = ns * f * (x1.dtype.itemsize + x2.dtype.itemsize)
    resident = x_bytes <= 2 * X_RESIDENT_BYTES
    if resident:
        x_spec = pl.BlockSpec((ns, f), lambda i, k: (0, 0))
    else:
        x_spec = pl.BlockSpec((ts, f), lambda i, k: (k, 0))
    cst = lambda i, k: (0, 0)
    out_map = lambda i, k: (i, 0)
    return pl.pallas_call(
        make_dual_graphconv_kernel(n_dst, tm, ts, resident),
        grid=(nd // tm, ns // ts),
        in_specs=[
            pl.BlockSpec((tm, ts), lambda i, k: (i, k)),
            x_spec, pl.BlockSpec((f, f), cst), pl.BlockSpec((1, f), cst),
            x_spec, pl.BlockSpec((f, f), cst), pl.BlockSpec((1, f), cst),
        ],
        out_specs=(pl.BlockSpec((tm, f), out_map), pl.BlockSpec((tm, f), out_map)),
        out_shape=(jax.ShapeDtypeStruct((nd, f), jnp.bfloat16),
                   jax.ShapeDtypeStruct((nd, f), jnp.bfloat16)),
        scratch_shapes=[pltpu.VMEM((tm, f), jnp.float32),
                        pltpu.VMEM((tm, f), jnp.float32)],
        compiler_params=_CP_2D,
    )(a, x1, w1, b1, x2, w2, b2)


def gat_proj(x, w, al_row, ar_row):
    n = x.shape[0]
    f = w.shape[1]
    tm = _pick_tile(n, (1024, 512, 256))
    cst = lambda i: (0, 0)
    row = lambda i: (i, 0)
    return pl.pallas_call(
        gat_proj_kernel,
        grid=(n // tm,),
        in_specs=[pl.BlockSpec((tm, f), row),
                  pl.BlockSpec((f, f), cst),
                  pl.BlockSpec((1, f), cst),
                  pl.BlockSpec((1, f), cst)],
        out_specs=(pl.BlockSpec((tm, f), row),
                   pl.BlockSpec((tm, 1), row),
                   pl.BlockSpec((tm, 1), row)),
        out_shape=(jax.ShapeDtypeStruct((n, f), jnp.bfloat16),
                   jax.ShapeDtypeStruct((n, 1), jnp.float32),
                   jax.ShapeDtypeStruct((n, 1), jnp.float32)),
        compiler_params=_CP_1D_PAR,
    )(x, w, al_row, ar_row)


def gat_attend(adj, er_col, el_row, z, b, n_dst):
    nd, ns = adj.shape
    f = z.shape[1]
    tm = _pick_tile(nd, (1024, 512, 256))
    ts = _pick_tile(ns, (512, 256))
    return pl.pallas_call(
        make_gat_attend_kernel(n_dst, tm),
        grid=(nd // tm, ns // ts),
        in_specs=[
            pl.BlockSpec((tm, ts), lambda i, k: (i, k)),
            pl.BlockSpec((tm, 1), lambda i, k: (i, 0)),
            pl.BlockSpec((1, ts), lambda i, k: (0, k)),
            pl.BlockSpec((ts, f), lambda i, k: (k, 0)),
            pl.BlockSpec((1, f), lambda i, k: (0, 0)),
        ],
        out_specs=pl.BlockSpec((tm, f), lambda i, k: (i, 0)),
        out_shape=jax.ShapeDtypeStruct((nd, f), jnp.bfloat16),
        scratch_shapes=[pltpu.VMEM((tm, 1), jnp.float32),
                        pltpu.VMEM((tm, 1), jnp.float32),
                        pltpu.VMEM((tm, f), jnp.float32)],
        compiler_params=_CP_2D,
    )(adj, er_col, el_row, z, b)


def rating_pre(u_feat, i_feat, ratings_p, n_edges):
    e_pad, f = u_feat.shape
    te = _pick_tile(e_pad, (2048, 1024, 512, 256))
    s11 = jax.ShapeDtypeStruct((1, 1), jnp.float32)
    row = lambda i: (i, 0)
    cst = lambda i: (0, 0)
    scores, sse, sae = pl.pallas_call(
        rating_pre_kernel,
        grid=(e_pad // te,),
        in_specs=[pl.BlockSpec((te, f), row),
                  pl.BlockSpec((te, f), row),
                  pl.BlockSpec((te, 1), row)],
        out_specs=(pl.BlockSpec((te, 1), row),
                   pl.BlockSpec((1, 1), cst),
                   pl.BlockSpec((1, 1), cst)),
        out_shape=(jax.ShapeDtypeStruct((e_pad, 1), jnp.float32), s11, s11),
        compiler_params=_CP_1D_ARB,
    )(u_feat, i_feat, ratings_p)
    inv_e = 1.0 / float(n_edges)                  # normalize by TRUE edge count
    return scores, sse * inv_e, sae * inv_e


def user_side_losses(x, t, a, w, b, n_valid):
    n, f = x.shape
    tm = _pick_tile(n, (1024, 512, 256))
    s11 = jax.ShapeDtypeStruct((1, 1), jnp.float32)
    row = lambda i: (i, 0)
    cst = lambda i: (0, 0)
    return pl.pallas_call(
        make_user_loss_kernel(n_valid, tm),
        grid=(n // tm,),
        in_specs=[pl.BlockSpec((tm, f), row),
                  pl.BlockSpec((tm, f), row),
                  pl.BlockSpec((tm, f), row),
                  pl.BlockSpec((f, f), cst),
                  pl.BlockSpec((1, f), cst)],
        out_specs=(pl.BlockSpec((1, 1), cst), pl.BlockSpec((1, 1), cst)),
        out_shape=(s11, s11),
        compiler_params=_CP_1D_ARB,
    )(x, t, a, w, b)


def item_side_losses(x, a, w, b, n_valid):
    n, f = x.shape
    tm = _pick_tile(n, (1024, 512, 256))
    s11 = jax.ShapeDtypeStruct((1, 1), jnp.float32)
    row = lambda i: (i, 0)
    cst = lambda i: (0, 0)
    return pl.pallas_call(
        make_item_loss_kernel(n_valid, tm),
        grid=(n // tm,),
        in_specs=[pl.BlockSpec((tm, f), row),
                  pl.BlockSpec((tm, f), row),
                  pl.BlockSpec((f, f), cst),
                  pl.BlockSpec((1, f), cst)],
        out_specs=(pl.BlockSpec((1, 1), cst), pl.BlockSpec((1, 1), cst),
                   pl.BlockSpec((1, 1), cst)),
        out_shape=(s11, s11, s11),
        compiler_params=_CP_1D_ARB,
    )(x, a, w, b)


# ----------------------------------------------------------------------------
# Parameter / graph construction (host glue)
# ----------------------------------------------------------------------------

def _pad2(x, r, c, dtype=None):
    y = jnp.pad(x, ((0, r - x.shape[0]), (0, c - x.shape[1])))
    return y.astype(dtype) if dtype is not None else y


def init_params(key, f):
    def lin(k, fin, fout, scale=0.1):
        kw, kb = jax.random.split(k)
        return {"w": scale * jax.random.normal(kw, (fin, fout), jnp.float32),
                "b": scale * jax.random.normal(kb, (1, fout), jnp.float32)}

    keys = jax.random.split(key, 20)
    return {
        "conv1": {"rated": lin(keys[0], f, f), "rated-by": lin(keys[1], f, f),
                  "trust": lin(keys[2], f, f)},
        "conv2": {"rated": lin(keys[3], f, f), "rated-by": lin(keys[4], f, f),
                  "trust": lin(keys[5], f, f)},
        "conv1att": {"rated": lin(keys[6], f, f), "rated-by": lin(keys[7], f, f)},
        "conv2att": {"rated": lin(keys[8], f, f), "rated-by": lin(keys[9], f, f)},
        "gat": {"w": 0.1 * jax.random.normal(keys[10], (f, f), jnp.float32),
                "attn_l": 0.1 * jax.random.normal(keys[11], (f, 1), jnp.float32),
                "attn_r": 0.1 * jax.random.normal(keys[12], (f, 1), jnp.float32),
                "b": 0.1 * jax.random.normal(keys[13], (1, f), jnp.float32)},
        "trust_layer2": lin(keys[14], f, f),
        "attitude_u": lin(keys[15], f, f),
        "attitude_i": lin(keys[16], f, f),
    }


def prep_params(p, f_pad):
    # pad feature dims to the 128-lane width, weights bf16 (MXU), biases f32
    def lin(d):
        return {"w": _pad2(d["w"], f_pad, f_pad, jnp.bfloat16),
                "b": _pad2(d["b"], 1, f_pad)}

    return {
        "conv1": {k: lin(v) for k, v in p["conv1"].items()},
        "conv2": {k: lin(v) for k, v in p["conv2"].items()},
        "conv1att": {k: lin(v) for k, v in p["conv1att"].items()},
        "conv2att": {k: lin(v) for k, v in p["conv2att"].items()},
        "gat": {"w": _pad2(p["gat"]["w"], f_pad, f_pad, jnp.bfloat16),
                "al": _pad2(p["gat"]["attn_l"].T, 1, f_pad),
                "ar": _pad2(p["gat"]["attn_r"].T, 1, f_pad),
                "b": _pad2(p["gat"]["b"], 1, f_pad)},
        "trust_layer2": lin(p["trust_layer2"]),
        "attitude_u": lin(p["attitude_u"]),
        "attitude_i": lin(p["attitude_i"]),
    }


def sym_norm(adj):
    # DGL GraphConv norm='both': D_dst^-1/2 A D_src^-1/2 (degrees clamped >= 1)
    deg_in = np.clip(adj.sum(axis=1, keepdims=True), 1.0, None)
    deg_out = np.clip(adj.sum(axis=0, keepdims=True), 1.0, None)
    return (adj / np.sqrt(deg_in) / np.sqrt(deg_out)).astype(np.float32)


def pad_np(a, r, c):
    out = np.zeros((r, c), np.float32)
    out[:a.shape[0], :a.shape[1]] = a
    return out


# ----------------------------------------------------------------------------
# MI3Graph forward
# ----------------------------------------------------------------------------

def mi3graph_forward(params, graphs, user_emb, item_emb, trust_emb,
                     a_emb_uid, a_emb_iid, ratings_p, edge_u_p, edge_i_p,
                     n_uid, n_iid, n_edges):
    rated_n, ratedby_n = graphs["rated_norm"], graphs["ratedby_norm"]
    trust_n = graphs["trust_norm"]
    trust_sl_adj, trust_sl_norm = graphs["trust_sl_adj"], graphs["trust_sl_norm"]
    c1, c2 = params["conv1"], params["conv2"]
    c1a, c2a = params["conv1att"], params["conv2att"]

    # ---- layer 1: conv1 (aggregate='mean') + conv1att, adjacency shared ----
    x1_iid, a1_iid = graphconv_dual(
        rated_n, user_emb, c1["rated"]["w"], c1["rated"]["b"],
        a_emb_uid, c1a["rated"]["w"], c1a["rated"]["b"], n_dst=n_iid)
    x1_uid_rb, a1_uid = graphconv_dual(
        ratedby_n, item_emb, c1["rated-by"]["w"], c1["rated-by"]["b"],
        a_emb_iid, c1a["rated-by"]["w"], c1a["rated-by"]["b"], n_dst=n_uid)
    x1_uid = graphconv(trust_n, user_emb, c1["trust"]["w"], c1["trust"]["b"],
                       n_dst=n_uid, combine="mean", other=x1_uid_rb)

    # ---- layer 2: conv2 (aggregate='max') + conv2att, adjacency shared ----
    x2_iid, a2_iid = graphconv_dual(
        rated_n, x1_uid, c2["rated"]["w"], c2["rated"]["b"],
        a1_uid, c2a["rated"]["w"], c2a["rated"]["b"], n_dst=n_iid)
    x2_uid_rb, a2_uid = graphconv_dual(
        ratedby_n, x1_iid, c2["rated-by"]["w"], c2["rated-by"]["b"],
        a1_iid, c2a["rated-by"]["w"], c2a["rated-by"]["b"], n_dst=n_uid)
    x2_uid = graphconv(trust_n, x1_uid, c2["trust"]["w"], c2["trust"]["b"],
                       n_dst=n_uid, combine="max", other=x2_uid_rb)

    # ---- trust branch: GATConv (streaming softmax) -> dropout -> GraphConv ----
    g = params["gat"]
    z, el_col, er_col = gat_proj(trust_emb, g["w"], g["al"], g["ar"])
    el_row = el_col.reshape(1, -1)                 # lane-dense (1, N) row (host reshape)
    t1 = gat_attend(trust_sl_adj, er_col, el_row, z, g["b"], n_dst=n_uid)
    # TODO(synk): Dropout(p=0.1) applied as identity (deterministic / eval behaviour).
    t = graphconv(trust_sl_norm, t1, params["trust_layer2"]["w"],
                  params["trust_layer2"]["b"], n_dst=n_uid)

    # ---- Rating_Trust_Pre (surrogate): per-edge dot score fused with MSE/MAE ----
    # TODO(synk): per-edge gather stays in XLA (jnp.take); padded edge indices
    # point at zeroed padding rows so padded edges contribute exactly 0.
    u_feat = jnp.take(x2_uid, edge_u_p, axis=0)
    i_feat = jnp.take(x2_iid, edge_i_p, axis=0)
    scores_p, rating_loss_v, mae = rating_pre(u_feat, i_feat, ratings_p, n_edges)
    pos_score = scores_p[:n_edges]

    au, ai = params["attitude_u"], params["attitude_i"]
    reg_u, latt_u = user_side_losses(x2_uid, t, a2_uid, au["w"], au["b"], n_uid)
    reg_i, loss_a_x, latt_i = item_side_losses(x2_iid, a2_iid, ai["w"], ai["b"], n_iid)
    loss_reg = reg_u + reg_i
    l_att = latt_u + latt_i

    # TODO(synk): Rating_Trust_Pre internals unavailable -> trust AUC/AP/loss are zero placeholders.
    trust_auc = jnp.zeros((1, 1), jnp.float32)
    trust_ap = jnp.zeros((1, 1), jnp.float32)
    loss_trust = jnp.zeros((1, 1), jnp.float32)

    return (rating_loss_v, mae, loss_reg, pos_score, l_att, loss_a_x,
            trust_auc, trust_ap, loss_trust)


# ----------------------------------------------------------------------------
# main
# ----------------------------------------------------------------------------

if __name__ == "__main__":
    n_uid, n_iid, F = 8, 12, 32
    NU, NI = _rup(n_uid + 1, NODE_PAD), _rup(n_iid + 1, NODE_PAD)
    F_PAD = _rup(F, LANE)

    key = jax.random.PRNGKey(0)
    k_emb, k_par, k_rate = jax.random.split(key, 3)
    ke = jax.random.split(k_emb, 5)

    # node features live in bf16 in HBM (MXU-native, halves the feature stream)
    user_emb = _pad2(jax.random.normal(ke[0], (n_uid, F), jnp.float32), NU, F_PAD, jnp.bfloat16)
    item_emb = _pad2(jax.random.normal(ke[1], (n_iid, F), jnp.float32), NI, F_PAD, jnp.bfloat16)
    trust_emb = _pad2(jax.random.normal(ke[2], (n_uid, F), jnp.float32), NU, F_PAD, jnp.bfloat16)
    a_emb_uid = _pad2(jax.random.normal(ke[3], (n_uid, F), jnp.float32), NU, F_PAD, jnp.bfloat16)
    a_emb_iid = _pad2(jax.random.normal(ke[4], (n_iid, F), jnp.float32), NI, F_PAD, jnp.bfloat16)

    params = prep_params(init_params(k_par, F), F_PAD)

    # deterministic dense graph structure (numpy glue)
    rng = np.random.RandomState(0)
    A_rated = (rng.rand(n_iid, n_uid) < 0.35).astype(np.float32)   # uid -> iid
    for i in range(n_iid):
        A_rated[i, i % n_uid] = 1.0                                # guarantee coverage
    A_ratedby = A_rated.T.copy()                                   # iid -> uid
    A_trust = (rng.rand(n_uid, n_uid) < 0.3).astype(np.float32)    # uid -> uid
    np.fill_diagonal(A_trust, 0.0)
    A_trust_sl = A_trust + np.eye(n_uid, dtype=np.float32)         # dgl.add_self_loop

    graphs = {
        # sym-normalized adjacencies: f32 on the host, stored bf16 for the MXU/DMA
        "rated_norm": jnp.asarray(pad_np(sym_norm(A_rated), NI, NU), jnp.bfloat16),
        "ratedby_norm": jnp.asarray(pad_np(sym_norm(A_ratedby), NU, NI), jnp.bfloat16),
        "trust_norm": jnp.asarray(pad_np(sym_norm(A_trust), NU, NU), jnp.bfloat16),
        # attention adjacency is a pure mask -> int8 halves its HBM stream
        "trust_sl_adj": jnp.asarray(pad_np(A_trust_sl, NU, NU), jnp.int8),
        "trust_sl_norm": jnp.asarray(pad_np(sym_norm(A_trust_sl), NU, NU), jnp.bfloat16),
    }

    # rated edge list + ratings (g.edges['rated'].data['rating'])
    dst_i, src_u = np.nonzero(A_rated)
    E = int(src_u.shape[0])
    E_PAD = _rup(E, EDGE_PAD)
    # padded edges index the (zeroed) padding rows -> contribute exactly 0
    edge_u_np = np.full((E_PAD,), n_uid, np.int32); edge_u_np[:E] = src_u
    edge_i_np = np.full((E_PAD,), n_iid, np.int32); edge_i_np[:E] = dst_i
    edge_u_p = jnp.asarray(edge_u_np)
    edge_i_p = jnp.asarray(edge_i_np)
    ratings = 1.0 + 4.0 * jax.random.uniform(k_rate, (E, 1), jnp.float32)
    ratings_np = np.zeros((E_PAD, 1), np.float32)
    ratings_np[:E] = np.asarray(ratings)
    ratings_p = jnp.asarray(ratings_np)

    outs = mi3graph_forward(params, graphs, user_emb, item_emb, trust_emb,
                            a_emb_uid, a_emb_iid, ratings_p, edge_u_p, edge_i_p,
                            n_uid, n_iid, E)
    outs = jax.block_until_ready(outs)
    print("KERNEL_OK")
</pallas_src>

<mosaic_0001>
module attributes {stable_mosaic.version = 11 : i64} {
  func.func @kernel(%arg0: i32, %arg1: i32, %arg2: memref<256x256xbf16, #tpu.memory_space<vmem>>, %arg3: memref<256x128xbf16, #tpu.memory_space<vmem>>, %arg4: memref<128x128xbf16, #tpu.memory_space<vmem>>, %arg5: memref<1x128xf32, #tpu.memory_space<vmem>>, %arg6: memref<256x128xbf16, #tpu.memory_space<vmem>>, %arg7: memref<128x128xbf16, #tpu.memory_space<vmem>>, %arg8: memref<1x128xf32, #tpu.memory_space<vmem>>, %arg9: memref<256x128xbf16, #tpu.memory_space<vmem>>, %arg10: memref<256x128xbf16, #tpu.memory_space<vmem>>, %arg11: memref<256x128xf32, #tpu.memory_space<vmem>>, %arg12: memref<256x128xf32, #tpu.memory_space<vmem>>) attributes {dimension_semantics = [#tpu.dimension_semantics<parallel>, #tpu.dimension_semantics<arbitrary>], iteration_bounds = array<i64: 1, 1>, scalar_prefetch = 0 : i64, scratch_operands = 2 : i64, tpu.core_type = #tpu.core_type<tc>, window_params = [{transform_indices = @transform_0, window_bounds = array<i64: 256, 256>}, {pipeline_mode = #tpu.pipeline_mode<synchronous>, transform_indices = @transform_1, window_bounds = array<i64: 256, 128>}, {pipeline_mode = #tpu.pipeline_mode<synchronous>, transform_indices = @transform_2, window_bounds = array<i64: 128, 128>}, {pipeline_mode = #tpu.pipeline_mode<synchronous>, transform_indices = @transform_3, window_bounds = array<i64: 1, 128>}, {pipeline_mode = #tpu.pipeline_mode<synchronous>, transform_indices = @transform_4, window_bounds = array<i64: 256, 128>}, {pipeline_mode = #tpu.pipeline_mode<synchronous>, transform_indices = @transform_5, window_bounds = array<i64: 128, 128>}, {pipeline_mode = #tpu.pipeline_mode<synchronous>, transform_indices = @transform_6, window_bounds = array<i64: 1, 128>}, {transform_indices = @transform_7, window_bounds = array<i64: 256, 128>}, {transform_indices = @transform_8, window_bounds = array<i64: 256, 128>}]} {
    %c256_i32 = arith.constant 256 : i32
    %0 = arith.muli %arg0, %c256_i32 : i32
    %1 = tpu.iota {dimensions = array<i32: 0>} : vector<256x1xi32>
    %2 = vector.broadcast %0 : i32 to vector<256x1xi32>
    %3 = arith.addi %2, %1 : vector<256x1xi32>
    %c12_i32 = arith.constant 12 : i32
    %4 = vector.broadcast %c12_i32 : i32 to vector<256x1xi32>
    %5 = arith.cmpi slt, %3, %4 : vector<256x1xi32>
    %c0_i32 = arith.constant 0 : i32
    %6 = arith.cmpi eq, %arg1, %c0_i32 : i32
    %7 = arith.extui %6 : i1 to i32
    %c0_i32_0 = arith.constant 0 : i32
    %8 = arith.cmpi ne, %7, %c0_i32_0 : i32
    scf.if %8 {
      %cst_17 = arith.constant 0.000000e+00 : f32
      %27 = vector.broadcast %cst_17 : f32 to vector<256x128xf32>
      %c0_18 = arith.constant 0 : index
      %c0_19 = arith.constant 0 : index
      %28 = vector.load %arg11[%c0_18, %c0_19] : memref<256x128xf32, #tpu.memory_space<vmem>>, vector<256x128xf32>
      tpu.vector_store %arg11[%c0_18, %c0_19], %27 {strides = array<i32>} : memref<256x128xf32, #tpu.memory_space<vmem>>, vector<256x128xf32>,
      %cst_20 = arith.constant 0.000000e+00 : f32
      %29 = vector.broadcast %cst_20 : f32 to vector<256x128xf32>
      %c0_21 = arith.constant 0 : index
      %c0_22 = arith.constant 0 : index
      %30 = vector.load %arg12[%c0_21, %c0_22] : memref<256x128xf32, #tpu.memory_space<vmem>>, vector<256x128xf32>
      tpu.vector_store %arg12[%c0_21, %c0_22], %29 {strides = array<i32>} : memref<256x128xf32, #tpu.memory_space<vmem>>, vector<256x128xf32>,
    } else {
    }
    %c0 = arith.constant 0 : index
    %c0_1 = arith.constant 0 : index
    %9 = vector.load %arg2[%c0, %c0_1] : memref<256x256xbf16, #tpu.memory_space<vmem>>, vector<256x256xbf16>
    %c256_i32_2 = arith.constant 256 : i32
    %10 = arith.muli %arg1, %c256_i32_2 : i32
    %11 = arith.index_cast %10 : i32 to index
    %c0_3 = arith.constant 0 : index
    %12 = vector.load %arg3[%11, %c0_3] : memref<256x128xbf16, #tpu.memory_space<vmem>>, vector<256x128xbf16>
    %c256_i32_4 = arith.constant 256 : i32
    %13 = arith.muli %arg1, %c256_i32_4 : i32
    %14 = arith.index_cast %13 : i32 to index
    %c0_5 = arith.constant 0 : index
    %15 = vector.load %arg6[%14, %c0_5] : memref<256x128xbf16, #tpu.memory_space<vmem>>, vector<256x128xbf16>
    %c0_6 = arith.constant 0 : index
    %c0_7 = arith.constant 0 : index
    %16 = vector.load %arg11[%c0_6, %c0_7] : memref<256x128xf32, #tpu.memory_space<vmem>>, vector<256x128xf32>
    %cst = arith.constant dense<0.000000e+00> : vector<256x128xf32>
    %17 = tpu.matmul %9, %12, %cst {dimension_numbers = #tpu.dot_dimension_numbers<[1], [0], [0], [1], [0, 0, 1, 1], [], []>} : vector<256x256xbf16>, vector<256x128xbf16>, vector<256x128xf32> -> vector<256x128xf32>
    %18 = arith.addf %16, %17 : vector<256x128xf32>
    %c0_8 = arith.constant 0 : index
    %c0_9 = arith.constant 0 : index
    %19 = vector.load %arg11[%c0_8, %c0_9] : memref<256x128xf32, #tpu.memory_space<vmem>>, vector<256x128xf32>
    tpu.vector_store %arg11[%c0_8, %c0_9], %18 {strides = array<i32>} : memref<256x128xf32, #tpu.memory_space<vmem>>, vector<256x128xf32>,
    %c0_10 = arith.constant 0 : index
    %c0_11 = arith.constant 0 : index
    %20 = vector.load %arg12[%c0_10, %c0_11] : memref<256x128xf32, #tpu.memory_space<vmem>>, vector<256x128xf32>
    %cst_12 = arith.constant dense<0.000000e+00> : vector<256x128xf32>
    %21 = tpu.matmul %9, %15, %cst_12 {dimension_numbers = #tpu.dot_dimension_numbers<[1], [0], [0], [1], [0, 0, 1, 1], [], []>} : vector<256x256xbf16>, vector<256x128xbf16>, vector<256x128xf32> -> vector<256x128xf32>
    %22 = arith.addf %20, %21 : vector<256x128xf32>
    %c0_13 = arith.constant 0 : index
    %c0_14 = arith.constant 0 : index
    %23 = vector.load %arg12[%c0_13, %c0_14] : memref<256x128xf32, #tpu.memory_space<vmem>>, vector<256x128xf32>
    tpu.vector_store %arg12[%c0_13, %c0_14], %22 {strides = array<i32>} : memref<256x128xf32, #tpu.memory_space<vmem>>, vector<256x128xf32>,
    %c0_i32_15 = arith.constant 0 : i32
    %24 = arith.cmpi eq, %arg1, %c0_i32_15 : i32
    %25 = arith.extui %24 : i1 to i32
    %c0_i32_16 = arith.constant 0 : i32
    %26 = arith.cmpi ne, %25, %c0_i32_16 : i32
    scf.if %26 {
      %c0_17 = arith.constant 0 : index
      %c0_18 = arith.constant 0 : index
      %27 = vector.load %arg11[%c0_17, %c0_18] : memref<256x128xf32, #tpu.memory_space<vmem>>, vector<256x128xf32>
      %28 = arith.truncf %27 : vector<256x128xf32> to vector<256x128xbf16>
      %c0_19 = arith.constant 0 : index
      %c0_20 = arith.constant 0 : index
      %29 = vector.load %arg4[%c0_19, %c0_20] : memref<128x128xbf16, #tpu.memory_space<vmem>>, vector<128x128xbf16>
      %cst_21 = arith.constant dense<0.000000e+00> : vector<256x128xf32>
      %30 = tpu.matmul %28, %29, %cst_21 {dimension_numbers = #tpu.dot_dimension_numbers<[1], [0], [0], [1], [0, 0, 1, 1], [], []>} : vector<256x128xbf16>, vector<128x128xbf16>, vector<256x128xf32> -> vector<256x128xf32>
      %c0_22 = arith.constant 0 : index
      %c0_23 = arith.constant 0 : index
      %31 = vector.load %arg5[%c0_22, %c0_23] : memref<1x128xf32, #tpu.memory_space<vmem>>, vector<1x128xf32>
      %32 = vector.broadcast %31 : vector<1x128xf32> to vector<256x128xf32>
      %33 = arith.addf %30, %32 : vector<256x128xf32>
      %c0_24 = arith.constant 0 : index
      %c0_25 = arith.constant 0 : index
      %34 = vector.load %arg12[%c0_24, %c0_25] : memref<256x128xf32, #tpu.memory_space<vmem>>, vector<256x128xf32>
      %35 = arith.truncf %34 : vector<256x128xf32> to vector<256x128xbf16>
      %c0_26 = arith.constant 0 : index
      %c0_27 = arith.constant 0 : index
      %36 = vector.load %arg7[%c0_26, %c0_27] : memref<128x128xbf16, #tpu.memory_space<vmem>>, vector<128x128xbf16>
      %cst_28 = arith.constant dense<0.000000e+00> : vector<256x128xf32>
      %37 = tpu.matmul %35, %36, %cst_28 {dimension_numbers = #tpu.dot_dimension_numbers<[1], [0], [0], [1], [0, 0, 1, 1], [], []>} : vector<256x128xbf16>, vector<128x128xbf16>, vector<256x128xf32> -> vector<256x128xf32>
      %c0_29 = arith.constant 0 : index
      %c0_30 = arith.constant 0 : index
      %38 = vector.load %arg8[%c0_29, %c0_30] : memref<1x128xf32, #tpu.memory_space<vmem>>, vector<1x128xf32>
      %39 = vector.broadcast %38 : vector<1x128xf32> to vector<256x128xf32>
      %40 = arith.addf %37, %39 : vector<256x128xf32>
      %cst_31 = arith.constant 0.000000e+00 : f32
      %41 = vector.broadcast %cst_31 : f32 to vector<256x128xf32>
      %42 = arith.cmpf oge, %33, %41 : vector<256x128xf32>
      %cst_32 = arith.constant 0.00999999977 : f32
      %43 = vector.broadcast %cst_32 : f32 to vector<256x128xf32>
      %44 = arith.mulf %43, %33 : vector<256x128xf32>
      %45 = arith.select %42, %33, %44 : vector<256x128xi1>, vector<256x128xf32>
      %cst_33 = arith.constant 0.000000e+00 : f32
      %46 = vector.shape_cast %5 : vector<256x1xi1> to vector<256x1xi1>
      %47 = vector.broadcast %46 : vector<256x1xi1> to vector<256x128xi1>
      %48 = vector.broadcast %cst_33 : f32 to vector<256x128xf32>
      %49 = arith.select %47, %45, %48 : vector<256x128xi1>, vector<256x128xf32>
      %50 = arith.truncf %49 : vector<256x128xf32> to vector<256x128xbf16>
      %c0_34 = arith.constant 0 : index
      %c0_35 = arith.constant 0 : index
      %51 = vector.load %arg9[%c0_34, %c0_35] : memref<256x128xbf16, #tpu.memory_space<vmem>>, vector<256x128xbf16>
      tpu.vector_store %arg9[%c0_34, %c0_35], %50 {strides = array<i32>} : memref<256x128xbf16, #tpu.memory_space<vmem>>, vector<256x128xbf16>,
      %cst_36 = arith.constant 0.000000e+00 : f32
      %52 = vector.broadcast %cst_36 : f32 to vector<256x128xf32>
      %53 = arith.cmpf oge, %40, %52 : vector<256x128xf32>
      %cst_37 = arith.constant 0.00999999977 : f32
      %54 = vector.broadcast %cst_37 : f32 to vector<256x128xf32>
      %55 = arith.mulf %54, %40 : vector<256x128xf32>
      %56 = arith.select %53, %40, %55 : vector<256x128xi1>, vector<256x128xf32>
      %cst_38 = arith.constant 0.000000e+00 : f32
      %57 = vector.shape_cast %5 : vector<256x1xi1> to vector<256x1xi1>
      %58 = vector.broadcast %57 : vector<256x1xi1> to vector<256x128xi1>
      %59 = vector.broadcast %cst_38 : f32 to vector<256x128xf32>
      %60 = arith.select %58, %56, %59 : vector<256x128xi1>, vector<256x128xf32>
      %61 = arith.truncf %60 : vector<256x128xf32> to vector<256x128xbf16>
      %c0_39 = arith.constant 0 : index
      %c0_40 = arith.constant 0 : index
      %62 = vector.load %arg10[%c0_39, %c0_40] : memref<256x128xbf16, #tpu.memory_space<vmem>>, vector<256x128xbf16>
      tpu.vector_store %arg10[%c0_39, %c0_40], %61 {strides = array<i32>} : memref<256x128xbf16, #tpu.memory_space<vmem>>, vector<256x128xbf16>,
    } else {
    }
    return
  }
  func.func @transform_0(%arg0: i32, %arg1: i32) -> (i32, i32) {
    %c0_i32 = arith.constant 0 : i32
    return %arg0, %arg1 : i32, i32
  }
  func.func @transform_1(%arg0: i32, %arg1: i32) -> (i32, i32) {
    %c0_i32 = arith.constant 0 : i32
    %c0_i32_0 = arith.constant 0 : i32
    %c0_i32_1 = arith.constant 0 : i32
    return %c0_i32, %c0_i32_0 : i32, i32
  }
  func.func @transform_2(%arg0: i32, %arg1: i32) -> (i32, i32) {
    %c0_i32 = arith.constant 0 : i32
    %c0_i32_0 = arith.constant 0 : i32
    %c0_i32_1 = arith.constant 0 : i32
    return %c0_i32, %c0_i32_0 : i32, i32
  }
  func.func @transform_3(%arg0: i32, %arg1: i32) -> (i32, i32) {
    %c0_i32 = arith.constant 0 : i32
    %c0_i32_0 = arith.constant 0 : i32
    %c0_i32_1 = arith.constant 0 : i32
    return %c0_i32, %c0_i32_0 : i32, i32
  }
  func.func @transform_4(%arg0: i32, %arg1: i32) -> (i32, i32) {
    %c0_i32 = arith.constant 0 : i32
    %c0_i32_0 = arith.constant 0 : i32
    %c0_i32_1 = arith.constant 0 : i32
    return %c0_i32, %c0_i32_0 : i32, i32
  }
  func.func @transform_5(%arg0: i32, %arg1: i32) -> (i32, i32) {
    %c0_i32 = arith.constant 0 : i32
    %c0_i32_0 = arith.constant 0 : i32
    %c0_i32_1 = arith.constant 0 : i32
    return %c0_i32, %c0_i32_0 : i32, i32
  }
  func.func @transform_6(%arg0: i32, %arg1: i32) -> (i32, i32) {
    %c0_i32 = arith.constant 0 : i32
    %c0_i32_0 = arith.constant 0 : i32
    %c0_i32_1 = arith.constant 0 : i32
    return %c0_i32, %c0_i32_0 : i32, i32
  }
  func.func @transform_7(%arg0: i32, %arg1: i32) -> (i32, i32) {
    %c0_i32 = arith.constant 0 : i32
    %c0_i32_0 = arith.constant 0 : i32
    return %arg0, %c0_i32 : i32, i32
  }
  func.func @transform_8(%arg0: i32, %arg1: i32) -> (i32, i32) {
    %c0_i32 = arith.constant 0 : i32
    %c0_i32_0 = arith.constant 0 : i32
    return %arg0, %c0_i32 : i32, i32
  }
}

</mosaic_0001>

<bundles_post_ra>
// kernel: tpu_custom_call.1
= control target key start
LH: loop header
LB: loop body
LE: loop exit
PB: predicated region body
PF: predicated region fallthrough
CT: control target
= control target key end

     0   :  { %14 = vsyncpa [#allocation5], 0  ;;  %s3289_s0 = inlined_call_operand.hbm [shape: bf16[256,256], index: 0, kind: input, shape index: {}]   ;;  %s3290_s1 = inlined_call_operand.hbm [shape: bf16[256,128], index: 1, kind: input, shape index: {}]   ;;  %s3291_s2 = inlined_call_operand.hbm [shape: bf16[128,128], index: 2, kind: input, shape index: {}]   ;;  %s3292_s3 = inlined_call_operand.vmem [shape: f32[1,128], index: 3, kind: input, shape index: {}]   ;;  %s3293_s4 = inlined_call_operand.hbm [shape: bf16[256,128], index: 4, kind: input, shape index: {}]   ;;  %s3294_s5 = inlined_call_operand.hbm [shape: bf16[128,128], index: 5, kind: input, shape index: {}]   ;;  %s3295_s6 = inlined_call_operand.vmem [shape: f32[1,128], index: 6, kind: input, shape index: {}]   ;;  %s3296_s7 = inlined_call_operand.hbm [shape: bf16[256,128], index: 7, kind: output, shape index: {0}]   ;;  %s3297_s8 = inlined_call_operand.hbm [shape: bf16[256,128], index: 8, kind: output, shape index: {1}]  }
   0x1   :  { %15 = vsyncpa [#allocation8], 0 }
   0x2   :  { %16 = vsyncpa [#allocation11], 0 }
   0x3   :  { %17 = vsyncpa [#allocation6], 0  ;;  %s36_s29 = sshll.u32 %s3290_s1, 4  ;;  %s37_s29 = int_to_ptr.hbm [resolvable:$true] %s36_s29 }
   0x4   :  { %18 = vsyncpa [#allocation15], 0  ;;  %s2980_s30 = smov [#allocation7]   ;;  %s64_s12 = sshll.u32 %s3293_s4, 4  ;;  %s65_s12 = int_to_ptr.hbm [resolvable:$true] %s64_s12 }
   0x5   :  { %s38_s9 = sshll.u32 %s2980_s30, 4  ;;  %s2981_s13 = smov 64   ;;  %s39_s9 = int_to_ptr.vmem [resolvable:$true] %s38_s9 }
   0x6   :  { %s2982_s14 = smov 4   ;;  %s2983_s15 = smov [#allocation10]  }
   0x7   :  { %44 = dma.hbm_to_vmem [thread:$0]  %s37_s29, 2048, %s39_s9, [#allocation8], %s2981_s13, %s2981_s13, %s2982_s14  }
   0x8   :  { %s66_s16 = sshll.u32 %s2983_s15, 4  ;;  %s23_s18 = sshll.u32 %s3289_s0, 4  ;;  %s67_s16 = int_to_ptr.vmem [resolvable:$true] %s66_s16  ;;  %s24_s18 = int_to_ptr.hbm [resolvable:$true] %s23_s18 }
   0x9   :  { %72 = dma.hbm_to_vmem [thread:$0]  %s65_s12, 2048, %s67_s16, [#allocation11], %s2981_s13, %s2981_s13, %s2982_s14  }
   0xa   :  { %s2984_s4 = smov [#allocation4]   ;;  %s49_s22 = sshll.u32 %s3291_s2, 4  ;;  %s50_s22 = int_to_ptr.hbm [resolvable:$true] %s49_s22 }
   0xb   :  { %s25_s19 = sshll.u32 %s2984_s4, 4  ;;  %s2985_s23 = smov 128   ;;  %s26_s19 = int_to_ptr.vmem [resolvable:$true] %s25_s19 }
   0xc   :  { %s2986_s24 = smov 8   ;;  %s2987_s25 = smov [#allocation9]  }
   0xd   :  { %31 = dma.hbm_to_vmem [thread:$0]  %s24_s18, 4096, %s26_s19, [#allocation5], %s2985_s23, %s2985_s23, %s2986_s24  }
   0xe   :  { %s51_s26 = sshll.u32 %s2987_s25, 4  ;;  %s77_s28 = sshll.u32 %s3294_s5, 4  ;;  %s52_s26 = int_to_ptr.vmem [resolvable:$true] %s51_s26  ;;  %s78_s28 = int_to_ptr.hbm [resolvable:$true] %s77_s28 }
   0xf   :  { %57 = dma.hbm_to_vmem [thread:$0]  %s50_s22, 1024, %s52_s26, [#allocation8], %s2981_s13, %s2981_s13, %s2982_s14  }
  0x10   :  { %s2988_s29 = smov [#allocation12]  }
  0x11   :  { %s79_s30 = sshll.u32 %s2988_s29, 4  ;;  %s80_s30 = int_to_ptr.vmem [resolvable:$true] %s79_s30 }
  0x12   :  { %85 = dma.hbm_to_vmem [thread:$0]  %s78_s28, 1024, %s80_s30, [#allocation11], %s2981_s13, %s2981_s13, %s2982_s14  }
  0x13   :  { %2970 = dma.done.wait [#allocation5], 4096  }
  0x14   :  { %2971 = vsyncadd [#allocation5], 4294963200 }
  0x15   :  { %2972 = dma.done.wait [#allocation8], 3072  }
  0x16   :  { %2973 = vsyncadd [#allocation8], 4294964224 }
  0x17   :  { %2974 = dma.done.wait [#allocation11], 3072  }
  0x18   :  { %2975 = vsyncadd [#allocation11], 4294964224  ;;  %v2541_v0 = vld [vmem:[#allocation7 + $0x38] sm:$0xff]  ;;  %v2540_v2 = vld [vmem:[#allocation7 + $0x30] sm:$0xff]  ;;  %s2145_s15 = sshll.u32 %s3296_s7, 4  ;;  %s2991_s7 = smov [#allocation14]   ;;  %s2146_s15 = int_to_ptr.hbm [resolvable:$true] %s2145_s15 }
  0x19   :  { %v2549_v1 = vld [vmem:[#allocation7 + $0x78] sm:$0xff]  ;;  %666 = vmatpush.bf16.msra.mxu0 %v2541_v0  ;;  %2772 = vmatpush.bf16.msra.mxu2 %v2541_v0  ;;  %v2548_v3 = vld [vmem:[#allocation7 + $0x70] sm:$0xff]  ;;  %v2539_v4 = vld [vmem:[#allocation7 + $0x28] sm:$0xff]  ;;  %s2156_s16 = sshll.u32 %s2991_s7, 4  ;;  %s2158_s18 = sshll.u32 %s3297_s8, 4  ;;  %s2157_s16 = int_to_ptr.vmem [resolvable:$true] %s2156_s16  ;;  %s2159_s18 = int_to_ptr.hbm [resolvable:$true] %s2158_s18 }
  0x1a   :  { %755 = vmatpush.bf16.msra.mxu1 %v2549_v1  ;;  %2780 = vmatpush.bf16.msra.mxu3 %v2549_v1  ;;  %v2547_v5 = vld [vmem:[#allocation7 + $0x68] sm:$0xff]  ;;  %v2538_v6 = vld [vmem:[#allocation7 + $0x20] sm:$0xff]  ;;  %v2537_v8 = vld [vmem:[#allocation7 + $0x18] sm:$0xff] }
  0x1b   :  { %v2546_v7 = vld [vmem:[#allocation7 + $0x60] sm:$0xff]  ;;  %v2545_v9 = vld [vmem:[#allocation7 + $0x58] sm:$0xff]  ;;  %v2536_v10 = vld [vmem:[#allocation7 + $0x10] sm:$0xff] }
  0x1c   :  { %v2544_v11 = vld [vmem:[#allocation7 + $0x50] sm:$0xff]  ;;  %v2535_v12 = vld [vmem:[#allocation7 + $0x8] sm:$0xff]  ;;  %v2534_v14 = vld [vmem:[#allocation7] sm:$0xff] }
  0x1d   :  { %667 = vmatpush.bf16.msra.mxu0 %v2540_v2  ;;  %2773 = vmatpush.bf16.msra.mxu2 %v2540_v2  ;;  %v2543_v13 = vld [vmem:[#allocation7 + $0x48] sm:$0xff]  ;;  %v2542_v15 = vld [vmem:[#allocation7 + $0x40] sm:$0xff]  ;;  %v2557_v24 = vld [vmem:[#allocation10 + $0x38] sm:$0xff] }
  0x1e   :  { %756 = vmatpush.bf16.msra.mxu1 %v2548_v3  ;;  %2781 = vmatpush.bf16.msra.mxu3 %v2548_v3  ;;  %v2184_v16 = vld [vmem:[#allocation4] sm:$0xf]  ;;  %v2503_v17 = vld [vmem:[#allocation4 + $0x4] sm:$0xf0]  ;;  %v2502_v20 = vld [vmem:[#allocation4 + $0x4] sm:$0xf] }
  0x1f   :  { %v2248_v18 = vld [vmem:[#allocation4 + $0x80] sm:$0xf]  ;;  %v2519_v19 = vld [vmem:[#allocation4 + $0x84] sm:$0xf0]  ;;  %v2186_v21 = vld [vmem:[#allocation4 + $0x8] sm:$0xf0]  ;;  %v3064_v26 = vor.u32 %v2503_v17, %v2184_v16 }
  0x20   :  { %v2518_v22 = vld [vmem:[#allocation4 + $0x84] sm:$0xf]  ;;  %v2250_v23 = vld [vmem:[#allocation4 + $0x88] sm:$0xf0]  ;;  %v2565_v25 = vld [vmem:[#allocation10 + $0x78] sm:$0xff]  ;;  %v3066_v27 = vor.u32 %v2519_v19, %v2248_v18  ;;  %v3068_v28 = vor.u32 %v2502_v20, %v2186_v21 }
  0x21   :  { %668 = vmatpush.bf16.msra.mxu0 %v2539_v4  ;;  %2774 = vmatpush.bf16.msra.mxu2 %v2539_v4  ;;  %v3070_v29 = vor.u32 %v2518_v22, %v2250_v23  ;;  %v2556_v30 = vld [vmem:[#allocation10 + $0x30] sm:$0xff]  ;;  %v2555_v32 = vld [vmem:[#allocation10 + $0x28] sm:$0xff]  ;;  %v2505_v35 = vld [vmem:[#allocation4 + $0x14] sm:$0xf0] }
  0x22   :  { %757 = vmatpush.bf16.msra.mxu1 %v2547_v5  ;;  %2782 = vmatpush.bf16.msra.mxu3 %v2547_v5  ;;  %v2564_v31 = vld [vmem:[#allocation10 + $0x70] sm:$0xff]  ;;  %v2563_v33 = vld [vmem:[#allocation10 + $0x68] sm:$0xff]  ;;  %v2521_v37 = vld [vmem:[#allocation4 + $0x94] sm:$0xf0] }
  0x23   :  { %v2192_v34 = vld [vmem:[#allocation4 + $0x10] sm:$0xf]  ;;  %v2504_v38 = vld [vmem:[#allocation4 + $0x14] sm:$0xf]  ;;  %v2194_v39 = vld [vmem:[#allocation4 + $0x18] sm:$0xf0] }
  0x24   :  { %v2256_v36 = vld [vmem:[#allocation4 + $0x90] sm:$0xf]  ;;  %v2520_v40 = vld [vmem:[#allocation4 + $0x94] sm:$0xf]  ;;  %v2258_v41 = vld [vmem:[#allocation4 + $0x98] sm:$0xf0]  ;;  %v3076_v42 = vor.u32 %v2505_v35, %v2192_v34  ;;  %v3080_v44 = vor.u32 %v2504_v38, %v2194_v39 }
  0x25   :  { %669 = vmatpush.bf16.msra.mxu0 %v2538_v6  ;;  %2775 = vmatpush.bf16.msra.mxu2 %v2538_v6  ;;  %v3078_v43 = vor.u32 %v2521_v37, %v2256_v36  ;;  %v3082_v45 = vor.u32 %v2520_v40, %v2258_v41  ;;  %v2554_v46 = vld [vmem:[#allocation10 + $0x20] sm:$0xff]  ;;  %v2507_v49 = vld [vmem:[#allocation4 + $0x24] sm:$0xf0]  ;;  %v2202_v53 = vld [vmem:[#allocation4 + $0x28] sm:$0xf0] }
  0x26   :  { %758 = vmatpush.bf16.msra.mxu1 %v2546_v7  ;;  %2783 = vmatpush.bf16.msra.mxu3 %v2546_v7  ;;  %v2562_v47 = vld [vmem:[#allocation10 + $0x60] sm:$0xff]  ;;  %v2523_v51 = vld [vmem:[#allocation4 + $0xa4] sm:$0xf0]  ;;  %v2266_v55 = vld [vmem:[#allocation4 + $0xa8] sm:$0xf0] }
  0x27   :  { %v2200_v48 = vld [vmem:[#allocation4 + $0x20] sm:$0xf]  ;;  %v2506_v52 = vld [vmem:[#allocation4 + $0x24] sm:$0xf]  ;;  %v2553_v60 = vld [vmem:[#allocation10 + $0x18] sm:$0xff] }
  0x28   :  { %v2264_v50 = vld [vmem:[#allocation4 + $0xa0] sm:$0xf]  ;;  %v2522_v54 = vld [vmem:[#allocation4 + $0xa4] sm:$0xf]  ;;  %v3088_v56 = vor.u32 %v2507_v49, %v2200_v48  ;;  %v3092_v58 = vor.u32 %v2506_v52, %v2202_v53  ;;  %v2561_v61 = vld [vmem:[#allocation10 + $0x58] sm:$0xff] }
  0x29   :  { %670 = vmatpush.bf16.msra.mxu0 %v2537_v8  ;;  %2776 = vmatpush.bf16.msra.mxu2 %v2537_v8  ;;  %v3090_v57 = vor.u32 %v2523_v51, %v2264_v50  ;;  %v3094_v59 = vor.u32 %v2522_v54, %v2266_v55  ;;  %v2208_v62 = vld [vmem:[#allocation4 + $0x30] sm:$0xf]  ;;  %v2509_v63 = vld [vmem:[#allocation4 + $0x34] sm:$0xf0]  ;;  %v2508_v2 = vld [vmem:[#allocation4 + $0x34] sm:$0xf] }
  0x2a   :  { %759 = vmatpush.bf16.msra.mxu1 %v2545_v9  ;;  %2784 = vmatpush.bf16.msra.mxu3 %v2545_v9  ;;  %v2272_v0 = vld [vmem:[#allocation4 + $0xb0] sm:$0xf]  ;;  %v2525_v1 = vld [vmem:[#allocation4 + $0xb4] sm:$0xf0]  ;;  %v2210_v3 = vld [vmem:[#allocation4 + $0x38] sm:$0xf0]  ;;  %v3100_v6 = vor.u32 %v2509_v63, %v2208_v62 }
  0x2b   :  { %v2524_v4 = vld [vmem:[#allocation4 + $0xb4] sm:$0xf]  ;;  %v2274_v5 = vld [vmem:[#allocation4 + $0xb8] sm:$0xf0]  ;;  %v3102_v7 = vor.u32 %v2525_v1, %v2272_v0  ;;  %v3104_v8 = vor.u32 %v2508_v2, %v2210_v3  ;;  %v2510_v16 = vld [vmem:[#allocation4 + $0x44] sm:$0xf] }
  0x2c   :  { %v3106_v9 = vor.u32 %v2524_v4, %v2274_v5  ;;  %v2218_v17 = vld [vmem:[#allocation4 + $0x48] sm:$0xf0]  ;;  %v2526_v18 = vld [vmem:[#allocation4 + $0xc4] sm:$0xf]  ;;  %v2288_v34 = vld [vmem:[#allocation4 + $0xd0] sm:$0xf] }
  0x2d   :  { %671 = vmatpush.bf16.msra.mxu0 %v2536_v10  ;;  %2777 = vmatpush.bf16.msra.mxu2 %v2536_v10  ;;  %v2552_v10 = vld [vmem:[#allocation10 + $0x10] sm:$0xff]  ;;  %v2282_v19 = vld [vmem:[#allocation4 + $0xc8] sm:$0xf0]  ;;  %v3116_v22 = vor.u32 %v2510_v16, %v2218_v17  ;;  %v2529_v35 = vld [vmem:[#allocation4 + $0xd4] sm:$0xf0] }
  0x2e   :  { %760 = vmatpush.bf16.msra.mxu1 %v2544_v11  ;;  %2785 = vmatpush.bf16.msra.mxu3 %v2544_v11  ;;  %v2560_v11 = vld [vmem:[#allocation10 + $0x50] sm:$0xff]  ;;  %v3118_v23 = vor.u32 %v2526_v18, %v2282_v19  ;;  %v2226_v37 = vld [vmem:[#allocation4 + $0x58] sm:$0xf0]  ;;  %v3126_v41 = vor.u32 %v2529_v35, %v2288_v34  ;;  %v2550_v48 = vld [vmem:[#allocation10] sm:$0xff] }
  0x2f   :  { %v2512_v36 = vld [vmem:[#allocation4 + $0x54] sm:$0xf]  ;;  %v2290_v39 = vld [vmem:[#allocation4 + $0xd8] sm:$0xf0]  ;;  %v2558_v49 = vld [vmem:[#allocation10 + $0x40] sm:$0xff] }
  0x30   :  { %v2528_v38 = vld [vmem:[#allocation4 + $0xd4] sm:$0xf]  ;;  %v2571_v50 = vld [vmem:[#allocation9 + $0x28] sm:$0xff]  ;;  %v2570_v51 = vld [vmem:[#allocation9 + $0x20] sm:$0xff] }
  0x31   :  { %672 = vmatpush.bf16.msra.mxu0 %v2535_v12  ;;  %2778 = vmatpush.bf16.msra.mxu2 %v2535_v12  ;;  %v2216_v12 = vld [vmem:[#allocation4 + $0x40] sm:$0xf]  ;;  %v2515_v53 = vld [vmem:[#allocation4 + $0x64] sm:$0xf0]  ;;  %v2569_v54 = vld [vmem:[#allocation9 + $0x18] sm:$0xff] }
  0x32   :  { %761 = vmatpush.bf16.msra.mxu1 %v2543_v13  ;;  %2786 = vmatpush.bf16.msra.mxu3 %v2543_v13  ;;  %v2511_v13 = vld [vmem:[#allocation4 + $0x44] sm:$0xf0]  ;;  %v2232_v52 = vld [vmem:[#allocation4 + $0x60] sm:$0xf]  ;;  %v2234_v62 = vld [vmem:[#allocation4 + $0x68] sm:$0xf0] }
  0x33   :  { %v3112_v20 = vor.u32 %v2511_v13, %v2216_v12  ;;  %v2296_v55 = vld [vmem:[#allocation4 + $0xe0] sm:$0xf]  ;;  %v2530_v63 = vld [vmem:[#allocation4 + $0xe4] sm:$0xf]  ;;  %v2298_v0 = vld [vmem:[#allocation4 + $0xe8] sm:$0xf0]  ;;  %v3136_v1 = vor.u32 %v2515_v53, %v2232_v52 }
  0x34   :  { %v3142_v4 = vor.u32 %v2530_v63, %v2298_v0  ;;  %v2568_v5 = vld [vmem:[#allocation9 + $0x10] sm:$0xff]  ;;  %v2517_v13 = vld [vmem:[#allocation4 + $0x74] sm:$0xf0]  ;;  %v2242_v17 = vld [vmem:[#allocation4 + $0x78] sm:$0xf0] }
  0x35   :  { %673 = vmatpush.bf16.msra.mxu0 %v2534_v14  ;;  %2779 = vmatpush.bf16.msra.mxu2 %v2534_v14  ;;  %v2280_v14 = vld [vmem:[#allocation4 + $0xc0] sm:$0xf]  ;;  %v2240_v12 = vld [vmem:[#allocation4 + $0x70] sm:$0xf]  ;;  %v2516_v16 = vld [vmem:[#allocation4 + $0x74] sm:$0xf] }
  0x36   :  { %762 = vmatpush.bf16.msra.mxu1 %v2542_v15  ;;  %2787 = vmatpush.bf16.msra.mxu3 %v2542_v15  ;;  %v2527_v15 = vld [vmem:[#allocation4 + $0xc4] sm:$0xf0]  ;;  %v2532_v18 = vld [vmem:[#allocation4 + $0xf4] sm:$0xf]  ;;  %v2306_v19 = vld [vmem:[#allocation4 + $0xf8] sm:$0xf0] }
  0x37   :  { %v3114_v21 = vor.u32 %v2527_v15, %v2280_v14  ;;  %v2304_v14 = vld [vmem:[#allocation4 + $0xf0] sm:$0xf]  ;;  %v2533_v15 = vld [vmem:[#allocation4 + $0xf4] sm:$0xf0] }
  0x38   :  { %674 = vmatmul.bf16.vlgmr.msra.gmra.mxu0 %v3064_v26  ;;  %714 = vmatmul.bf16.vlgmr.msra.gmra.mxu2 %v3066_v27  ;;  %v2580_v35 = vld [vmem:[#allocation12 + $0x30] sm:$0xff] }
  0x39   :  { %1036 = vmatpush.bf16.msrb.mxu2 %v2557_v24  ;;  %763 = vmatmul.bf16.vlgmr.msra.gmra.mxu1 %v3068_v28  ;;  %v2551_v24 = vld [vmem:[#allocation10 + $0x8] sm:$0xff] }
  0x3a   :  { %1125 = vmatpush.bf16.msrb.mxu3 %v2565_v25  ;;  %v2559_v25 = vld [vmem:[#allocation10 + $0x48] sm:$0xff] }
  0x3b   :  { %803 = vmatmul.bf16.vlgmr.msra.gmra.mxu3 %v3070_v29 }
  0x3d   :  { %1037 = vmatpush.bf16.msrb.mxu2 %v2556_v30  ;;  %v2573_v30 = vld [vmem:[#allocation9 + $0x38] sm:$0xff] }
  0x3e   :  { %1126 = vmatpush.bf16.msrb.mxu3 %v2564_v31  ;;  %1397 = vmatpush.bf16.msrb.mxu0 %v2573_v30  ;;  %v2572_v31 = vld [vmem:[#allocation9 + $0x30] sm:$0xff]  ;;  %v3152_v30 = vor.u32 %v2516_v16, %v2242_v17  ;;  %v2578_v17 = vld [vmem:[#allocation12 + $0x20] sm:$0xff] }
  0x41   :  { %1038 = vmatpush.bf16.msrb.mxu2 %v2555_v32  ;;  %v2224_v32 = vld [vmem:[#allocation4 + $0x50] sm:$0xf] }
  0x42   :  { %1127 = vmatpush.bf16.msrb.mxu3 %v2563_v33  ;;  %v2513_v33 = vld [vmem:[#allocation4 + $0x54] sm:$0xf0]  ;;  %1398 = vmatpush.bf16.msrb.mxu0 %v2572_v31  ;;  %v3154_v31 = vor.u32 %v2532_v18, %v2306_v19 }
  0x43   :  { %v3124_v40 = vor.u32 %v2513_v33, %v2224_v32  ;;  %v2581_v32 = vld [vmem:[#allocation12 + $0x38] sm:$0xff] }
  0x44   :  { %1602 = vmatpush.bf16.msrb.mxu1 %v2581_v32 }
  0x45   :  { %1039 = vmatpush.bf16.msrb.mxu2 %v2554_v46  ;;  %v3128_v46 = vor.u32 %v2512_v36, %v2226_v37 }
  0x46   :  { %1128 = vmatpush.bf16.msrb.mxu3 %v2562_v47  ;;  %v3130_v47 = vor.u32 %v2528_v38, %v2290_v39  ;;  %1399 = vmatpush.bf16.msrb.mxu0 %v2571_v50 }
  0x48   :  { %679 = vmatmul.bf16.gmra.mxu0 %v3076_v42  ;;  %719 = vmatmul.bf16.gmra.mxu2 %v3078_v43 }
  0x49   :  { %768 = vmatmul.bf16.gmra.mxu1 %v3080_v44  ;;  %1040 = vmatpush.bf16.msrb.mxu2 %v2553_v60  ;;  %v2531_v60 = vld [vmem:[#allocation4 + $0xe4] sm:$0xf0] }
  0x4a   :  { %1129 = vmatpush.bf16.msrb.mxu3 %v2561_v61  ;;  %1400 = vmatpush.bf16.msrb.mxu0 %v2570_v51  ;;  %v2514_v61 = vld [vmem:[#allocation4 + $0x64] sm:$0xf]  ;;  %v3138_v2 = vor.u32 %v2531_v60, %v2296_v55  ;;  %v2579_v60 = vld [vmem:[#allocation12 + $0x28] sm:$0xff] }
  0x4b   :  { %808 = vmatmul.bf16.gmra.mxu3 %v3082_v45  ;;  %v3140_v3 = vor.u32 %v2514_v61, %v2234_v62  ;;  %1603 = vmatpush.bf16.msrb.mxu1 %v2580_v35 }
  0x4d   :  { %1041 = vmatpush.bf16.msrb.mxu2 %v2552_v10  ;;  %v2567_v10 = vld [vmem:[#allocation9 + $0x8] sm:$0xff] }
  0x4e   :  { %1130 = vmatpush.bf16.msrb.mxu3 %v2560_v11  ;;  %1401 = vmatpush.bf16.msrb.mxu0 %v2569_v54  ;;  %v2566_v11 = vld [vmem:[#allocation9] sm:$0xff] }
  0x4f   :  { %1604 = vmatpush.bf16.msrb.mxu1 %v2579_v60 }
  0x51   :  { %1042 = vmatpush.bf16.msrb.mxu2 %v2551_v24  ;;  %v3148_v24 = vor.u32 %v2517_v13, %v2240_v12 }
  0x52   :  { %1131 = vmatpush.bf16.msrb.mxu3 %v2559_v25  ;;  %1402 = vmatpush.bf16.msrb.mxu0 %v2568_v5  ;;  %v3150_v25 = vor.u32 %v2533_v15, %v2304_v14 }
  0x53   :  { %1605 = vmatpush.bf16.msrb.mxu1 %v2578_v17 }
  0x55   :  { %1043 = vmatpush.bf16.msrb.mxu2 %v2550_v48 }
  0x56   :  { %1132 = vmatpush.bf16.msrb.mxu3 %v2558_v49  ;;  %1403 = vmatpush.bf16.msrb.mxu0 %v2567_v10 }
  0x58   :  { %684 = vmatmul.bf16.gmra.mxu0 %v3088_v56  ;;  %724 = vmatmul.bf16.gmra.mxu2 %v3090_v57 }
  0x59   :  { %773 = vmatmul.bf16.gmra.mxu1 %v3092_v58 }
  0x5a   :  { %1404 = vmatpush.bf16.msrb.mxu0 %v2566_v11 }
  0x5b   :  { %813 = vmatmul.bf16.gmra.mxu3 %v3094_v59 }
  0x68   :  { %689 = vmatmul.bf16.gmra.mxu0 %v3100_v6  ;;  %729 = vmatmul.bf16.gmra.mxu2 %v3102_v7 }
  0x69   :  { %778 = vmatmul.bf16.gmra.mxu1 %v3104_v8 }
  0x6b   :  { %818 = vmatmul.bf16.gmra.mxu3 %v3106_v9 }
  0x78   :  { %694 = vmatmul.bf16.gmra.mxu0 %v3112_v20  ;;  %734 = vmatmul.bf16.gmra.mxu2 %v3114_v21 }
  0x79   :  { %783 = vmatmul.bf16.gmra.mxu1 %v3116_v22 }
  0x7b   :  { %823 = vmatmul.bf16.gmra.mxu3 %v3118_v23 }
  0x88   :  { %699 = vmatmul.bf16.gmra.mxu0 %v3124_v40  ;;  %739 = vmatmul.bf16.gmra.mxu2 %v3126_v41 }
  0x89   :  { %788 = vmatmul.bf16.gmra.mxu1 %v3128_v46 }
  0x8b   :  { %828 = vmatmul.bf16.gmra.mxu3 %v3130_v47 }
  0x98   :  { %704 = vmatmul.bf16.gmra.mxu0 %v3136_v1  ;;  %744 = vmatmul.bf16.gmra.mxu2 %v3138_v2 }
  0x99   :  { %793 = vmatmul.bf16.gmra.mxu1 %v3140_v3 }
  0x9b   :  { %833 = vmatmul.bf16.gmra.mxu3 %v3142_v4 }
  0xa8   :  { %709 = vmatmul.bf16.gmra.mxu0 %v3148_v24  ;;  %749 = vmatmul.bf16.gmra.mxu2 %v3150_v25 }
  0xa9   :  { %798 = vmatmul.bf16.gmra.mxu1 %v3152_v30 }
  0xab   :  { %838 = vmatmul.bf16.gmra.mxu3 %v3154_v31 }
  0xb5   :  { %v675_v33 = vpop.f32.mrf.mxu0 }
  0xb6   :  { %v764_v34 = vpop.f32.mrf.mxu1 }
  0xb7   :  { %v765_v38 = vadd.f32 %v764_v34, %v675_v33 }
  0xb8   :  { %1044 = vmatmul.bf16.vlgmr.msrb.gmra.mxu2 %v3064_v26 }
  0xbb   :  { %1133 = vmatmul.bf16.vlgmr.msrb.gmra.mxu3 %v3068_v28  ;;  %v715_v36 = vpop.f32.mrf.mxu2 }
  0xbd   :  { %v677_v48 = vpop.f32.mrf.mxu0 }
  0xbe   :  { %v804_v37 = vpop.f32.mrf.mxu3  ;;  %v766_v49 = vpop.f32.mrf.mxu1 }
  0xbf   :  { %v3162_v39 = vadd.f32 %v804_v37, %v715_v36  ;;  %v767_v50 = vadd.f32 %v766_v49, %v677_v48 }
  0xc1   :  { %v1313_v51 = vpack.c.bf16 %v767_v50, %v765_v38 }
  0xc3   :  { %1405 = vmatmul.bf16.vlgmr.msrb.gmra.mxu0 %v1313_v51  ;;  %v717_v52 = vpop.f32.mrf.mxu2  ;;  %v2577_v51 = vld [vmem:[#allocation12 + $0x18] sm:$0xff] }
  0xc4   :  { %1606 = vmatpush.bf16.msrb.mxu1 %v2577_v51 }
  0xc5   :  { %v680_v55 = vpop.f32.mrf.mxu0 }
  0xc6   :  { %v806_v53 = vpop.f32.mrf.mxu3  ;;  %v769_v26 = vpop.f32.mrf.mxu1 }
  0xc7   :  { %v3164_v54 = vadd.f32 %v806_v53, %v717_v52  ;;  %v770_v63 = vadd.f32 %v769_v26, %v680_v55 }
  0xc8   :  { %1049 = vmatmul.bf16.gmra.mxu2 %v3076_v42 }
  0xc9   :  { %v1321_v28 = vpack.c.bf16 %v3164_v54, %v3162_v39 }
  0xcb   :  { %1138 = vmatmul.bf16.gmra.mxu3 %v3080_v44  ;;  %v720_v61 = vpop.f32.mrf.mxu2 }
  0xcd   :  { %v682_v5 = vpop.f32.mrf.mxu0 }
  0xce   :  { %v809_v62 = vpop.f32.mrf.mxu3  ;;  %v771_v10 = vpop.f32.mrf.mxu1 }
  0xcf   :  { %v3170_v0 = vadd.f32 %v809_v62, %v720_v61  ;;  %v772_v11 = vadd.f32 %v771_v10, %v682_v5 }
  0xd1   :  { %v1314_v12 = vpack.c.bf16 %v772_v11, %v770_v63 }
  0xd3   :  { %1410 = vmatmul.bf16.gmra.mxu0 %v1314_v12  ;;  %v722_v13 = vpop.f32.mrf.mxu2 }
  0xd5   :  { %v685_v16 = vpop.f32.mrf.mxu0 }
  0xd6   :  { %v811_v14 = vpop.f32.mrf.mxu3  ;;  %v774_v42 = vpop.f32.mrf.mxu1 }
  0xd7   :  { %v3172_v15 = vadd.f32 %v811_v14, %v722_v13  ;;  %v775_v32 = vadd.f32 %v774_v42, %v685_v16  ;;  %v2576_v13 = vld [vmem:[#allocation12 + $0x10] sm:$0xff] }
  0xd8   :  { %1054 = vmatmul.bf16.gmra.mxu2 %v3088_v56  ;;  %1607 = vmatpush.bf16.msrb.mxu1 %v2576_v13 }
  0xd9   :  { %v1322_v44 = vpack.c.bf16 %v3172_v15, %v3170_v0 }
  0xdb   :  { %1143 = vmatmul.bf16.gmra.mxu3 %v3092_v58  ;;  %v725_v18 = vpop.f32.mrf.mxu2 }
  0xdd   :  { %v687_v34 = vpop.f32.mrf.mxu0 }
  0xde   :  { %v814_v19 = vpop.f32.mrf.mxu3  ;;  %v776_v35 = vpop.f32.mrf.mxu1 }
  0xdf   :  { %v3178_v33 = vadd.f32 %v814_v19, %v725_v18  ;;  %v777_v36 = vadd.f32 %v776_v35, %v687_v34 }
  0xe1   :  { %v1315_v37 = vpack.c.bf16 %v777_v36, %v775_v32 }
  0xe3   :  { %1415 = vmatmul.bf16.gmra.mxu0 %v1315_v37  ;;  %v727_v38 = vpop.f32.mrf.mxu2 }
  0xe5   :  { %v690_v50 = vpop.f32.mrf.mxu0 }
  0xe6   :  { %v816_v48 = vpop.f32.mrf.mxu3  ;;  %v779_v56 = vpop.f32.mrf.mxu1 }
  0xe7   :  { %v3180_v49 = vadd.f32 %v816_v48, %v727_v38  ;;  %v780_v55 = vadd.f32 %v779_v56, %v690_v50  ;;  %v2575_v48 = vld [vmem:[#allocation12 + $0x8] sm:$0xff] }
  0xe8   :  { %1059 = vmatmul.bf16.gmra.mxu2 %v3100_v6  ;;  %1608 = vmatpush.bf16.msrb.mxu1 %v2575_v48 }
  0xe9   :  { %v1323_v58 = vpack.c.bf16 %v3180_v49, %v3178_v33 }
  0xeb   :  { %1148 = vmatmul.bf16.gmra.mxu3 %v3104_v8  ;;  %v730_v52 = vpop.f32.mrf.mxu2 }
  0xed   :  { %v692_v60 = vpop.f32.mrf.mxu0 }
  0xee   :  { %v819_v53 = vpop.f32.mrf.mxu3  ;;  %v781_v61 = vpop.f32.mrf.mxu1 }
  0xef   :  { %v3186_v26 = vadd.f32 %v819_v53, %v730_v52  ;;  %v782_v62 = vadd.f32 %v781_v61, %v692_v60 }
  0xf1   :  { %v1316_v63 = vpack.c.bf16 %v782_v62, %v780_v55 }
  0xf3   :  { %1420 = vmatmul.bf16.gmra.mxu0 %v1316_v63  ;;  %v732_v5 = vpop.f32.mrf.mxu2 }
  0xf5   :  { %v695_v12 = vpop.f32.mrf.mxu0 }
  0xf6   :  { %v821_v10 = vpop.f32.mrf.mxu3  ;;  %v784_v6 = vpop.f32.mrf.mxu1 }
  0xf7   :  { %v3188_v11 = vadd.f32 %v821_v10, %v732_v5  ;;  %v785_v42 = vadd.f32 %v784_v6, %v695_v12  ;;  %v2574_v12 = vld [vmem:[#allocation12] sm:$0xff] }
  0xf8   :  { %1064 = vmatmul.bf16.gmra.mxu2 %v3112_v20  ;;  %1609 = vmatpush.bf16.msrb.mxu1 %v2574_v12  ;;  %v2800_v12 = vld [vmem:[%s3292_s3] ss:$0 sm:$0xff] }
  0xf9   :  { %v1324_v8 = vpack.c.bf16 %v3188_v11, %v3186_v26 }
  0xfb   :  { %1153 = vmatmul.bf16.gmra.mxu3 %v3116_v22  ;;  %v735_v14 = vpop.f32.mrf.mxu2 }
  0xfd   :  { %v697_v18 = vpop.f32.mrf.mxu0 }
  0xfe   :  { %v824_v16 = vpop.f32.mrf.mxu3  ;;  %v786_v19 = vpop.f32.mrf.mxu1 }
  0xff   :  { %v3194_v17 = vadd.f32 %v824_v16, %v735_v14  ;;  %v787_v32 = vadd.f32 %v786_v19, %v697_v18 }
 0x101   :  { %v1317_v34 = vpack.c.bf16 %v787_v32, %v785_v42 }
 0x103   :  { %1425 = vmatmul.bf16.gmra.mxu0 %v1317_v34  ;;  %v737_v35 = vpop.f32.mrf.mxu2 }
 0x105   :  { %v700_v38 = vpop.f32.mrf.mxu0 }
 0x106   :  { %v826_v36 = vpop.f32.mrf.mxu3  ;;  %v789_v20 = vpop.f32.mrf.mxu1 }
 0x107   :  { %v3196_v37 = vadd.f32 %v826_v36, %v737_v35  ;;  %v790_v51 = vadd.f32 %v789_v20, %v700_v38 }
 0x108   :  { %1069 = vmatmul.bf16.gmra.mxu2 %v3124_v40 }
 0x109   :  { %v1325_v22 = vpack.c.bf16 %v3196_v37, %v3194_v17 }
 0x10b   :  { %1158 = vmatmul.bf16.gmra.mxu3 %v3128_v46  ;;  %v740_v50 = vpop.f32.mrf.mxu2 }
 0x10d   :  { %v702_v53 = vpop.f32.mrf.mxu0 }
 0x10e   :  { %v829_v56 = vpop.f32.mrf.mxu3  ;;  %v791_v55 = vpop.f32.mrf.mxu1 }
 0x10f   :  { %v3202_v52 = vadd.f32 %v829_v56, %v740_v50  ;;  %v792_v60 = vadd.f32 %v791_v55, %v702_v53 }
 0x111   :  { %v1318_v61 = vpack.c.bf16 %v792_v60, %v790_v51 }
 0x113   :  { %1430 = vmatmul.bf16.gmra.mxu0 %v1318_v61  ;;  %v742_v62 = vpop.f32.mrf.mxu2 }
 0x115   :  { %v705_v10 = vpop.f32.mrf.mxu0 }
 0x116   :  { %v831_v63 = vpop.f32.mrf.mxu3  ;;  %v794_v40 = vpop.f32.mrf.mxu1 }
 0x117   :  { %v3204_v5 = vadd.f32 %v831_v63, %v742_v62  ;;  %v795_v14 = vadd.f32 %v794_v40, %v705_v10  ;;  %v109_v40 = vlaneseq }
 0x118   :  { %1074 = vmatmul.bf16.gmra.mxu2 %v3136_v1 }
 0x119   :  { %v1326_v46 = vpack.c.bf16 %v3204_v5, %v3202_v52 }
 0x11b   :  { %1163 = vmatmul.bf16.gmra.mxu3 %v3140_v3  ;;  %v745_v6 = vpop.f32.mrf.mxu2 }
 0x11d   :  { %v707_v42 = vpop.f32.mrf.mxu0 }
 0x11e   :  { %v834_v13 = vpop.f32.mrf.mxu3  ;;  %v796_v18 = vpop.f32.mrf.mxu1 }
 0x11f   :  { %v3210_v16 = vadd.f32 %v834_v13, %v745_v6  ;;  %v797_v19 = vadd.f32 %v796_v18, %v707_v42 }
 0x121   :  { %v1319_v32 = vpack.c.bf16 %v797_v19, %v795_v14  ;;  %v110_v14 = vshrl.u32 %v109_v40, 7 }
 0x123   :  { %1435 = vmatmul.bf16.gmra.mxu0 %v1319_v32  ;;  %v747_v34 = vpop.f32.mrf.mxu2 }
 0x125   :  { %v710_v38 = vpop.f32.mrf.mxu0 }
 0x126   :  { %v836_v35 = vpop.f32.mrf.mxu3  ;;  %v799_v1 = vpop.f32.mrf.mxu1 }
 0x127   :  { %v3212_v36 = vadd.f32 %v836_v35, %v747_v34  ;;  %v800_v50 = vadd.f32 %v799_v1, %v710_v38 }
 0x128   :  { %1079 = vmatmul.bf16.gmra.mxu2 %v3148_v24 }
 0x129   :  { %v1327_v3 = vpack.c.bf16 %v3212_v36, %v3210_v16 }
 0x12b   :  { %1168 = vmatmul.bf16.gmra.mxu3 %v3152_v30  ;;  %v750_v20 = vpop.f32.mrf.mxu2 }
 0x12d   :  { %v712_v51 = vpop.f32.mrf.mxu0 }
 0x12e   :  { %v839_v48 = vpop.f32.mrf.mxu3  ;;  %v801_v53 = vpop.f32.mrf.mxu1 }
 0x12f   :  { %v3218_v56 = vadd.f32 %v839_v48, %v750_v20  ;;  %v802_v55 = vadd.f32 %v801_v53, %v712_v51 }
 0x131   :  { %v1320_v60 = vpack.c.bf16 %v802_v55, %v800_v50 }
 0x133   :  { %1440 = vmatmul.bf16.gmra.mxu0 %v1320_v60  ;;  %v752_v61 = vpop.f32.mrf.mxu2 }
 0x136   :  { %v841_v62 = vpop.f32.mrf.mxu3 }
 0x137   :  { %v3220_v63 = vadd.f32 %v841_v62, %v752_v61 }
 0x138   :  { %1084 = vmatmul.bf16.gmra.mxu2 %v3066_v27 }
 0x139   :  { %v1328_v10 = vpack.c.bf16 %v3220_v63, %v3218_v56  ;;  %v2801_v56 = vld [vmem:[%s3295_s6] ss:$0 sm:$0xff]  ;;  %s2990_s6 = smov [#allocation13]  }
 0x13a   :  { %s2143_s10 = sshll.u32 %s2990_s6, 4  ;;  %s2144_s10 = int_to_ptr.vmem [resolvable:$true] %s2143_s10 }
 0x13b   :  { %1173 = vmatmul.bf16.gmra.mxu3 %v3070_v29  ;;  %v1045_v24 = vpop.f32.mrf.mxu2  ;;  %v3232_v29 = vadd.s32 8, %v110_v14 }
 0x13d   :  { %vm176_vm1 = vcmp.lt.s32.totalorder %v3232_v29, 12 }
 0x13e   :  { %v1134_v30 = vpop.f32.mrf.mxu3 }
 0x13f   :  { %v1135_v19 = vadd.f32 %v1134_v30, %v1045_v24 }
 0x140   :  { %v1406_v6 = vpop.f32.mrf.mxu0 }
 0x141   :  { %v1407_v42 = vadd.f32 %v2800_v12, %v1406_v6 }
 0x143   :  { %1445 = vmatmul.bf16.gmra.mxu0 %v1321_v28  ;;  %v1047_v13 = vpop.f32.mrf.mxu2  ;;  %v1723_v34 = vmul.f32 0.01, %v1407_v42  ;;  %vm1691_vm0 = vcmp.ge.f32.partialorder %v1407_v42, 0.0 }
 0x145   :  { %v1755_v28 = vsel %vm1691_vm0, %v1407_v42, %v1723_v34 }
 0x146   :  { %v1136_v18 = vpop.f32.mrf.mxu3 }
 0x147   :  { %v1137_v27 = vadd.f32 %v1136_v18, %v1047_v13 }
 0x148   :  { %v1408_v35 = vpop.f32.mrf.mxu0  ;;  %1089 = vmatmul.bf16.gmra.mxu2 %v3078_v43 }
 0x149   :  { %v1518_v32 = vpack.c.bf16 %v1137_v27, %v1135_v19  ;;  %v1409_v38 = vadd.f32 %v2800_v12, %v1408_v35 }
 0x14b   :  { %1178 = vmatmul.bf16.gmra.mxu3 %v3082_v45  ;;  %1610 = vmatmul.bf16.vlgmr.msrb.gmra.mxu1 %v1518_v32  ;;  %vm1692_vm2 = vcmp.ge.f32.partialorder %v1409_v38, 0.0  ;;  %v1724_v39 = vmul.f32 0.01, %v1409_v38  ;;  %v1050_v54 = vpop.f32.mrf.mxu2 }
 0x14d   :  { %v1756_v20 = vsel %vm1692_vm2, %v1409_v38, %v1724_v39 }
 0x14e   :  { %v1139_v1 = vpop.f32.mrf.mxu3  ;;  %v1852_v48 = vsel %vm176_vm1, %v1756_v20, 0.0 }
 0x14f   :  { %v2585_v50 = vpack.c.bf16 %v1852_v48, %v1755_v28  ;;  %v1140_v53 = vadd.f32 %v1139_v1, %v1050_v54 }
 0x150   :  { %v1411_v51 = vpop.f32.mrf.mxu0 }
 0x151   :  { %2586 = vst [vmem:[#allocation13] sm:$0xff] %v2585_v50  }
 0x153   :  { %1450 = vmatmul.bf16.gmra.mxu0 %v1322_v44  ;;  %v1052_v43 = vpop.f32.mrf.mxu2 }
 0x156   :  { %v1141_v45 = vpop.f32.mrf.mxu3 }
 0x157   :  { %v1142_v55 = vadd.f32 %v1141_v45, %v1052_v43 }
 0x158   :  { %v1413_v61 = vpop.f32.mrf.mxu0  ;;  %1094 = vmatmul.bf16.gmra.mxu2 %v3090_v57 }
 0x159   :  { %v1519_v60 = vpack.c.bf16 %v1142_v55, %v1140_v53 }
 0x15b   :  { %1183 = vmatmul.bf16.gmra.mxu3 %v3094_v59  ;;  %1615 = vmatmul.bf16.gmra.mxu1 %v1519_v60  ;;  %v1055_v62 = vpop.f32.mrf.mxu2 }
 0x15e   :  { %v1144_v24 = vpop.f32.mrf.mxu3 }
 0x15f   :  { %v1145_v44 = vadd.f32 %v1144_v24, %v1055_v62 }
 0x160   :  { %v1416_v30 = vpop.f32.mrf.mxu0 }
 0x163   :  { %1455 = vmatmul.bf16.gmra.mxu0 %v1323_v58  ;;  %v1057_v0 = vpop.f32.mrf.mxu2 }
 0x166   :  { %v1146_v15 = vpop.f32.mrf.mxu3 }
 0x167   :  { %v1147_v40 = vadd.f32 %v1146_v15, %v1057_v0 }
 0x168   :  { %v1418_v6 = vpop.f32.mrf.mxu0  ;;  %1099 = vmatmul.bf16.gmra.mxu2 %v3102_v7 }
 0x169   :  { %v1520_v12 = vpack.c.bf16 %v1147_v40, %v1145_v44 }
 0x16b   :  { %1188 = vmatmul.bf16.gmra.mxu3 %v3106_v9  ;;  %1620 = vmatmul.bf16.gmra.mxu1 %v1520_v12  ;;  %v1060_v57 = vpop.f32.mrf.mxu2 }
 0x16e   :  { %v1149_v59 = vpop.f32.mrf.mxu3 }
 0x16f   :  { %v1150_v58 = vadd.f32 %v1149_v59, %v1060_v57 }
 0x170   :  { %v1421_v13 = vpop.f32.mrf.mxu0 }
 0x173   :  { %1460 = vmatmul.bf16.gmra.mxu0 %v1324_v8  ;;  %v1062_v33 = vpop.f32.mrf.mxu2 }
 0x176   :  { %v1151_v49 = vpop.f32.mrf.mxu3 }
 0x177   :  { %v1152_v14 = vadd.f32 %v1151_v49, %v1062_v33 }
 0x178   :  { %v1423_v18 = vpop.f32.mrf.mxu0  ;;  %1104 = vmatmul.bf16.gmra.mxu2 %v3114_v21 }
 0x179   :  { %v1521_v42 = vpack.c.bf16 %v1152_v14, %v1150_v58 }
 0x17b   :  { %1193 = vmatmul.bf16.gmra.mxu3 %v3118_v23  ;;  %1625 = vmatmul.bf16.gmra.mxu1 %v1521_v42  ;;  %v1065_v7 = vpop.f32.mrf.mxu2 }
 0x17e   :  { %v1154_v9 = vpop.f32.mrf.mxu3 }
 0x17f   :  { %v1155_v8 = vadd.f32 %v1154_v9, %v1065_v7 }
 0x180   :  { %v1426_v19 = vpop.f32.mrf.mxu0 }
 0x183   :  { %1465 = vmatmul.bf16.gmra.mxu0 %v1325_v22  ;;  %v1067_v26 = vpop.f32.mrf.mxu2 }
 0x186   :  { %v1156_v11 = vpop.f32.mrf.mxu3 }
 0x187   :  { %v1157_v27 = vadd.f32 %v1156_v11, %v1067_v26 }
 0x188   :  { %v1428_v34 = vpop.f32.mrf.mxu0  ;;  %1109 = vmatmul.bf16.gmra.mxu2 %v3126_v41 }
 0x189   :  { %v1522_v32 = vpack.c.bf16 %v1157_v27, %v1155_v8 }
 0x18b   :  { %1198 = vmatmul.bf16.gmra.mxu3 %v3130_v47  ;;  %1630 = vmatmul.bf16.gmra.mxu1 %v1522_v32  ;;  %v1070_v21 = vpop.f32.mrf.mxu2 }
 0x18e   :  { %v1159_v23 = vpop.f32.mrf.mxu3 }
 0x18f   :  { %v1160_v22 = vadd.f32 %v1159_v23, %v1070_v21 }
 0x190   :  { %v1431_v35 = vpop.f32.mrf.mxu0 }
 0x193   :  { %1470 = vmatmul.bf16.gmra.mxu0 %v1326_v46  ;;  %v1072_v17 = vpop.f32.mrf.mxu2 }
 0x196   :  { %v1161_v37 = vpop.f32.mrf.mxu3 }
 0x197   :  { %v1162_v38 = vadd.f32 %v1161_v37, %v1072_v17 }
 0x198   :  { %v1433_v54 = vpop.f32.mrf.mxu0  ;;  %1114 = vmatmul.bf16.gmra.mxu2 %v3138_v2 }
 0x199   :  { %v1523_v39 = vpack.c.bf16 %v1162_v38, %v1160_v22 }
 0x19b   :  { %1203 = vmatmul.bf16.gmra.mxu3 %v3142_v4  ;;  %1635 = vmatmul.bf16.gmra.mxu1 %v1523_v39  ;;  %v1075_v41 = vpop.f32.mrf.mxu2 }
 0x19e   :  { %v1164_v47 = vpop.f32.mrf.mxu3 }
 0x19f   :  { %v1165_v46 = vadd.f32 %v1164_v47, %v1075_v41 }
 0x1a0   :  { %v1436_v28 = vpop.f32.mrf.mxu0 }
 0x1a3   :  { %1475 = vmatmul.bf16.gmra.mxu0 %v1327_v3  ;;  %v1077_v52 = vpop.f32.mrf.mxu2 }
 0x1a6   :  { %v1166_v5 = vpop.f32.mrf.mxu3 }
 0x1a7   :  { %v1167_v1 = vadd.f32 %v1166_v5, %v1077_v52 }
 0x1a8   :  { %v1438_v48 = vpop.f32.mrf.mxu0  ;;  %1119 = vmatmul.bf16.gmra.mxu2 %v3150_v25 }
 0x1a9   :  { %v1524_v20 = vpack.c.bf16 %v1167_v1, %v1165_v46 }
 0x1ab   :  { %1208 = vmatmul.bf16.gmra.mxu3 %v3154_v31  ;;  %1640 = vmatmul.bf16.gmra.mxu1 %v1524_v20  ;;  %v1080_v2 = vpop.f32.mrf.mxu2 }
 0x1ae   :  { %v1169_v4 = vpop.f32.mrf.mxu3 }
 0x1af   :  { %v1170_v3 = vadd.f32 %v1169_v4, %v1080_v2 }
 0x1b0   :  { %v1441_v50 = vpop.f32.mrf.mxu0 }
 0x1b3   :  { %1480 = vmatmul.bf16.gmra.mxu0 %v1328_v10  ;;  %v1082_v16 = vpop.f32.mrf.mxu2 }
 0x1b6   :  { %v1171_v36 = vpop.f32.mrf.mxu3 }
 0x1b7   :  { %v1172_v51 = vadd.f32 %v1171_v36, %v1082_v16 }
 0x1b8   :  { %v1443_v45 = vpop.f32.mrf.mxu0 }
 0x1b9   :  { %v1525_v43 = vpack.c.bf16 %v1172_v51, %v1170_v3 }
 0x1bb   :  { %1645 = vmatmul.bf16.gmra.mxu1 %v1525_v43  ;;  %v1085_v53 = vpop.f32.mrf.mxu2 }
 0x1be   :  { %v1174_v55 = vpop.f32.mrf.mxu3 }
 0x1bf   :  { %v1175_v61 = vadd.f32 %v1174_v55, %v1085_v53 }
 0x1c0   :  { %v1446_v25 = vpop.f32.mrf.mxu0 }
 0x1c3   :  { %v1087_v60 = vpop.f32.mrf.mxu2 }
 0x1c6   :  { %v1176_v31 = vpop.f32.mrf.mxu3 }
 0x1c7   :  { %v1177_v62 = vadd.f32 %v1176_v31, %v1087_v60 }
 0x1c8   :  { %v1611_v24 = vpop.f32.mrf.mxu1  ;;  %v1448_v63 = vpop.f32.mrf.mxu0 }
 0x1c9   :  { %v1526_v30 = vpack.c.bf16 %v1177_v62, %v1175_v61  ;;  %v1612_v0 = vadd.f32 %v2801_v56, %v1611_v24 }
 0x1cb   :  { %1650 = vmatmul.bf16.gmra.mxu1 %v1526_v30  ;;  %v1090_v10 = vpop.f32.mrf.mxu2  ;;  %v1979_v12 = vmul.f32 0.01, %v1612_v0  ;;  %vm1947_vm3 = vcmp.ge.f32.partialorder %v1612_v0, 0.0 }
 0x1cd   :  { %v2011_v33 = vsel %vm1947_vm3, %v1612_v0, %v1979_v12 }
 0x1ce   :  { %v1179_v15 = vpop.f32.mrf.mxu3 }
 0x1cf   :  { %v1180_v14 = vadd.f32 %v1179_v15, %v1090_v10 }
 0x1d0   :  { %v1613_v44 = vpop.f32.mrf.mxu1  ;;  %v1451_v6 = vpop.f32.mrf.mxu0 }
 0x1d1   :  { %v1614_v40 = vadd.f32 %v2801_v56, %v1613_v44 }
 0x1d3   :  { %vm1948_vm4 = vcmp.ge.f32.partialorder %v1614_v40, 0.0  ;;  %v1980_v57 = vmul.f32 0.01, %v1614_v40  ;;  %v1092_v13 = vpop.f32.mrf.mxu2 }
 0x1d5   :  { %v2012_v59 = vsel %vm1948_vm4, %v1614_v40, %v1980_v57 }
 0x1d6   :  { %v2044_v49 = vsel %vm176_vm1, %v2012_v59, 0.0  ;;  %v1181_v58 = vpop.f32.mrf.mxu3 }
 0x1d7   :  { %v2665_v42 = vpack.c.bf16 %v2044_v49, %v2011_v33  ;;  %v1182_v18 = vadd.f32 %v1181_v58, %v1092_v13 }
 0x1d8   :  { %v1616_v7 = vpop.f32.mrf.mxu1  ;;  %v1453_v19 = vpop.f32.mrf.mxu0 }
 0x1d9   :  { %2666 = vst [vmem:[#allocation14] sm:$0xff] %v2665_v42   ;;  %v1527_v9 = vpack.c.bf16 %v1182_v18, %v1180_v14 }
 0x1db   :  { %1655 = vmatmul.bf16.gmra.mxu1 %v1527_v9  ;;  %v1095_v26 = vpop.f32.mrf.mxu2 }
 0x1de   :  { %v1184_v11 = vpop.f32.mrf.mxu3 }
 0x1df   :  { %v1185_v21 = vadd.f32 %v1184_v11, %v1095_v26 }
 0x1e0   :  { %v1618_v8 = vpop.f32.mrf.mxu1  ;;  %v1456_v27 = vpop.f32.mrf.mxu0 }
 0x1e3   :  { %v1097_v32 = vpop.f32.mrf.mxu2 }
 0x1e6   :  { %v1186_v34 = vpop.f32.mrf.mxu3 }
 0x1e7   :  { %v1187_v23 = vadd.f32 %v1186_v34, %v1097_v32 }
 0x1e8   :  { %v1621_v35 = vpop.f32.mrf.mxu1  ;;  %v1458_v17 = vpop.f32.mrf.mxu0 }
 0x1e9   :  { %v1528_v29 = vpack.c.bf16 %v1187_v23, %v1185_v21 }
 0x1eb   :  { %1660 = vmatmul.bf16.gmra.mxu1 %v1528_v29  ;;  %v1100_v37 = vpop.f32.mrf.mxu2 }
 0x1ee   :  { %v1189_v22 = vpop.f32.mrf.mxu3 }
 0x1ef   :  { %v1190_v47 = vadd.f32 %v1189_v22, %v1100_v37 }
 0x1f0   :  { %v1623_v38 = vpop.f32.mrf.mxu1  ;;  %v1461_v39 = vpop.f32.mrf.mxu0 }
 0x1f1   :  { %v2989_v39 = vmov 0.0|0.0  }
 0x1f3   :  { %v1102_v54 = vpop.f32.mrf.mxu2 }
 0x1f6   :  { %v1191_v41 = vpop.f32.mrf.mxu3 }
 0x1f7   :  { %v1192_v28 = vadd.f32 %v1191_v41, %v1102_v54  ;;  %v2588_v54 = vunpack.c.l.bf16 %v2989_v39 }
 0x1f8   :  { %v1626_v52 = vpop.f32.mrf.mxu1  ;;  %v1463_v46 = vpop.f32.mrf.mxu0 }
 0x1f9   :  { %v1529_v5 = vpack.c.bf16 %v1192_v28, %v1190_v47  ;;  %v2590_v41 = vpack.c.bf16 %v2588_v54, %v2588_v54 }
 0x1fb   :  { %1665 = vmatmul.bf16.gmra.mxu1 %v1529_v5  ;;  %v1105_v1 = vpop.f32.mrf.mxu2  ;;  %2742 = vst [vmem:[#allocation13 + $0x8] sm:$0xff] %v2590_v41  }
 0x1fc   :  { %2743 = vst [vmem:[#allocation13 + $0x10] sm:$0xff] %v2590_v41  }
 0x1fd   :  { %2744 = vst [vmem:[#allocation13 + $0x18] sm:$0xff] %v2590_v41  }
 0x1fe   :  { %v1194_v20 = vpop.f32.mrf.mxu3  ;;  %2745 = vst [vmem:[#allocation13 + $0x20] sm:$0xff] %v2590_v41  }
 0x1ff   :  { %v1195_v16 = vadd.f32 %v1194_v20, %v1105_v1  ;;  %2746 = vst [vmem:[#allocation13 + $0x28] sm:$0xff] %v2590_v41  }
 0x200   :  { %v1628_v48 = vpop.f32.mrf.mxu1  ;;  %v1466_v2 = vpop.f32.mrf.mxu0  ;;  %2747 = vst [vmem:[#allocation13 + $0x30] sm:$0xff] %v2590_v41  }
 0x201   :  { %2748 = vst [vmem:[#allocation13 + $0x38] sm:$0xff] %v2590_v41  }
 0x202   :  { %2749 = vst [vmem:[#allocation13 + $0x40] sm:$0xff] %v2590_v41  }
 0x203   :  { %v1107_v4 = vpop.f32.mrf.mxu2  ;;  %2750 = vst [vmem:[#allocation13 + $0x48] sm:$0xff] %v2590_v41  }
 0x204   :  { %2751 = vst [vmem:[#allocation13 + $0x50] sm:$0xff] %v2590_v41  }
 0x205   :  { %2752 = vst [vmem:[#allocation13 + $0x58] sm:$0xff] %v2590_v41  }
 0x206   :  { %v1196_v50 = vpop.f32.mrf.mxu3  ;;  %2753 = vst [vmem:[#allocation13 + $0x60] sm:$0xff] %v2590_v41  }
 0x207   :  { %v1197_v36 = vadd.f32 %v1196_v50, %v1107_v4  ;;  %2754 = vst [vmem:[#allocation13 + $0x68] sm:$0xff] %v2590_v41  }
 0x208   :  { %v1631_v3 = vpop.f32.mrf.mxu1  ;;  %v1468_v43 = vpop.f32.mrf.mxu0  ;;  %2755 = vst [vmem:[#allocation13 + $0x70] sm:$0xff] %v2590_v41  }
 0x209   :  { %v1530_v51 = vpack.c.bf16 %v1197_v36, %v1195_v16  ;;  %2756 = vst [vmem:[#allocation13 + $0x78] sm:$0xff] %v2590_v41  }
 0x20a   :  { %2151 = dma.vmem_to_hbm [thread:$0]  %s2144_s10, 2048, %s2146_s15, [#allocation6], %s2981_s13, %s2981_s13, %s2982_s14   ;;  %2757 = vst [vmem:[#allocation14 + $0x8] sm:$0xff] %v2590_v41  }
 0x20b   :  { %1670 = vmatmul.bf16.gmra.mxu1 %v1530_v51  ;;  %v1110_v45 = vpop.f32.mrf.mxu2  ;;  %2758 = vst [vmem:[#allocation14 + $0x10] sm:$0xff] %v2590_v41  }
 0x20c   :  { %2759 = vst [vmem:[#allocation14 + $0x18] sm:$0xff] %v2590_v41  }
 0x20d   :  { %2760 = vst [vmem:[#allocation14 + $0x20] sm:$0xff] %v2590_v41  }
 0x20e   :  { %v1199_v53 = vpop.f32.mrf.mxu3  ;;  %2761 = vst [vmem:[#allocation14 + $0x28] sm:$0xff] %v2590_v41  }
 0x20f   :  { %v1200_v61 = vadd.f32 %v1199_v53, %v1110_v45  ;;  %2762 = vst [vmem:[#allocation14 + $0x30] sm:$0xff] %v2590_v41  }
 0x210   :  { %v1633_v55 = vpop.f32.mrf.mxu1  ;;  %v1471_v25 = vpop.f32.mrf.mxu0  ;;  %2763 = vst [vmem:[#allocation14 + $0x38] sm:$0xff] %v2590_v41  }
 0x211   :  { %2764 = vst [vmem:[#allocation14 + $0x40] sm:$0xff] %v2590_v41  }
 0x212   :  { %2765 = vst [vmem:[#allocation14 + $0x48] sm:$0xff] %v2590_v41  }
 0x213   :  { %v1112_v60 = vpop.f32.mrf.mxu2  ;;  %2766 = vst [vmem:[#allocation14 + $0x50] sm:$0xff] %v2590_v41  }
 0x214   :  { %2767 = vst [vmem:[#allocation14 + $0x58] sm:$0xff] %v2590_v41  }
 0x215   :  { %2768 = vst [vmem:[#allocation14 + $0x60] sm:$0xff] %v2590_v41  }
 0x216   :  { %v1201_v31 = vpop.f32.mrf.mxu3  ;;  %2769 = vst [vmem:[#allocation14 + $0x68] sm:$0xff] %v2590_v41  }
 0x217   :  { %v1202_v62 = vadd.f32 %v1201_v31, %v1112_v60  ;;  %2770 = vst [vmem:[#allocation14 + $0x70] sm:$0xff] %v2590_v41  }
 0x218   :  { %v1636_v24 = vpop.f32.mrf.mxu1  ;;  %v1473_v56 = vpop.f32.mrf.mxu0  ;;  %2771 = vst [vmem:[#allocation14 + $0x78] sm:$0xff] %v2590_v41  }
 0x219   :  { %v1531_v30 = vpack.c.bf16 %v1202_v62, %v1200_v61  ;;  %2164 = dma.vmem_to_hbm [thread:$0]  %s2157_s16, 2048, %s2159_s18, [#allocation15], %s2981_s13, %s2981_s13, %s2982_s14  }
 0x21b   :  { %1675 = vmatmul.bf16.gmra.mxu1 %v1531_v30  ;;  %v1115_v63 = vpop.f32.mrf.mxu2 }
 0x21e   :  { %v1204_v10 = vpop.f32.mrf.mxu3 }
 0x21f   :  { %v1205_v12 = vadd.f32 %v1204_v10, %v1115_v63 }
 0x220   :  { %v1638_v0 = vpop.f32.mrf.mxu1  ;;  %v1476_v15 = vpop.f32.mrf.mxu0 }
 0x223   :  { %v1117_v44 = vpop.f32.mrf.mxu2 }
 0x226   :  { %v1206_v40 = vpop.f32.mrf.mxu3 }
 0x227   :  { %v1207_v6 = vadd.f32 %v1206_v40, %v1117_v44 }
 0x228   :  { %v1641_v57 = vpop.f32.mrf.mxu1  ;;  %v1478_v13 = vpop.f32.mrf.mxu0 }
 0x229   :  { %v1532_v59 = vpack.c.bf16 %v1207_v6, %v1205_v12 }
 0x22b   :  { %1680 = vmatmul.bf16.gmra.mxu1 %v1532_v59  ;;  %v1120_v33 = vpop.f32.mrf.mxu2 }
 0x22e   :  { %v1209_v49 = vpop.f32.mrf.mxu3 }
 0x22f   :  { %v1210_v7 = vadd.f32 %v1209_v49, %v1120_v33 }
 0x230   :  { %v1643_v58 = vpop.f32.mrf.mxu1  ;;  %v1481_v14 = vpop.f32.mrf.mxu0 }
 0x233   :  { %v1122_v42 = vpop.f32.mrf.mxu2 }
 0x236   :  { %v1211_v18 = vpop.f32.mrf.mxu3 }
 0x237   :  { %v1212_v9 = vadd.f32 %v1211_v18, %v1122_v42 }
 0x238   :  { %v1646_v19 = vpop.f32.mrf.mxu1  ;;  %v1483_v11 = vpop.f32.mrf.mxu0 }
 0x239   :  { %v1533_v26 = vpack.c.bf16 %v1212_v9, %v1210_v7 }
 0x23b   :  { %1685 = vmatmul.bf16.gmra.mxu1 %v1533_v26 }
 0x240   :  { %v1648_v8 = vpop.f32.mrf.mxu1 }
 0x248   :  { %v1651_v27 = vpop.f32.mrf.mxu1 }
 0x250   :  { %v1653_v32 = vpop.f32.mrf.mxu1 }
 0x258   :  { %v1656_v34 = vpop.f32.mrf.mxu1 }
 0x260   :  { %v1658_v21 = vpop.f32.mrf.mxu1 }
 0x268   :  { %v1661_v23 = vpop.f32.mrf.mxu1 }
 0x270   :  { %v1663_v35 = vpop.f32.mrf.mxu1 }
 0x278   :  { %v1666_v29 = vpop.f32.mrf.mxu1 }
 0x280   :  { %v1668_v17 = vpop.f32.mrf.mxu1 }
 0x288   :  { %v1671_v37 = vpop.f32.mrf.mxu1 }
 0x290   :  { %v1673_v22 = vpop.f32.mrf.mxu1 }
 0x298   :  { %v1676_v38 = vpop.f32.mrf.mxu1 }
 0x2a0   :  { %v1678_v47 = vpop.f32.mrf.mxu1 }
 0x2a8   :  { %v1681_v28 = vpop.f32.mrf.mxu1 }
 0x2b0   :  { %v1683_v52 = vpop.f32.mrf.mxu1 }
 0x2b8   :  { %v1686_v5 = vpop.f32.mrf.mxu1 }
 0x2c0   :  { %v1688_v46 = vpop.f32.mrf.mxu1 }
 0x2c1   :  { %2976 = dma.done.wait [#allocation6], 2048  }
 0x2c2   :  { %2977 = vsyncadd [#allocation6], 4294965248 }
 0x2c3   :  { %2978 = dma.done.wait [#allocation15], 2048  }
 0x2c4   :  { %2979 = vsyncadd [#allocation15], 4294965248 }
 0x2c5   :  { %2173 = vsyncpa [#allocation5], 1 }
 0x2c6   :  { %2174 = vsyncpa [#allocation8], 1 }
 0x2c7   :  { %2175 = vsyncpa [#allocation11], 1 }
 0x2c8   :  { %2176 = vsyncpa [#allocation6], 1 }
 0x2c9   :  { %2177 = vsyncpa [#allocation15], 1 }

</bundles_post_ra>
